<compile_context>
chip_gen: v5e
topology: v5e:2x2
jax: 0.10.0
libtpu: 0.0.40
codegen_flags: <defaults>
</compile_context>

<pallas_src>
import functools

import numpy as np
import jax
import jax.numpy as jnp
from jax.experimental import pallas as pl
from jax.experimental.pallas import tpu as pltpu

# ----- small synthetic config (stands in for args.mae_encoder_dim etc.) -----
D = 32            # mae_encoder_dim
HEADS = 4         # attention heads (head_dim = 8)
MLP_RATIO = 4
NUM_LAYERS = 2    # mae_encoder_layers
LN_EPS = 1e-6     # MAE ViT-Base LayerNorm eps

MM_DT = jnp.bfloat16   # MXU operand dtype; accumulation is always f32
NEG_INF = -1e30        # additive key-pad mask; safe because scores stay f32


def _mm(a, b):
    """2-D a @ b on the MXU: bf16 operands, f32 accumulation."""
    return jax.lax.dot_general(
        a.astype(MM_DT), b.astype(MM_DT),
        dimension_numbers=(((1,), (0,)), ((), ())),
        preferred_element_type=jnp.float32)


def _layernorm(v, w, b):
    mu = jnp.mean(v, axis=-1, keepdims=True)
    c = v - mu
    var = jnp.mean(c * c, axis=-1, keepdims=True)
    return c * jax.lax.rsqrt(var + LN_EPS) * w + b


def vit_stack_kernel(tok_ref,
                     ln1w_ref, ln1b_ref, wqkv_ref, bqkv_ref, wproj_ref, bproj_ref,
                     ln2w_ref, ln2b_ref, fc1w_ref, fc1b_ref, fc2w_ref, fc2b_ref,
                     lnfw_ref, lnfb_ref, o_ref, *, n_real):
    """All transformer blocks + final LN for ONE (padded) sequence of Sp rows."""
    x = tok_ref[...]                            # (Sp, D) f32 residual stream
    sp, d = x.shape
    hd = d // HEADS
    scale = float(hd) ** -0.5

    # Key-padding bias, generated in-kernel (no HBM mask array): pad key columns
    # (col >= n_real) are masked out of every attention row.
    col = jax.lax.broadcasted_iota(jnp.int32, (1, 1, sp), 2)
    kmask = jnp.where(col < n_real, 0.0, NEG_INF).astype(jnp.float32)   # (1,1,Sp)

    for layer in range(NUM_LAYERS):             # static unroll: whole stack fused
        # ------------------------------ MHSA ------------------------------
        h = _layernorm(x, ln1w_ref[layer], ln1b_ref[layer])
        qkv = _mm(h, wqkv_ref[layer]) + bqkv_ref[layer]          # (Sp, 3D): 1 MXU op
        # Split into head-major (H, Sp, hd) stacks: cheap static lane slices stacked
        # along the leading axis (no per-head matmuls, no activation transposes).
        q = jnp.stack([qkv[:, i * hd:(i + 1) * hd] for i in range(HEADS)], axis=0)
        k = jnp.stack([qkv[:, d + i * hd:d + (i + 1) * hd] for i in range(HEADS)], axis=0)
        v = jnp.stack([qkv[:, 2 * d + i * hd:2 * d + (i + 1) * hd] for i in range(HEADS)], axis=0)

        # Head-batched scores + ONE batched softmax per layer.
        s = jnp.einsum('hqd,hkd->hqk', q.astype(MM_DT), k.astype(MM_DT),
                       preferred_element_type=jnp.float32) * scale + kmask
        m = jnp.max(s, axis=-1, keepdims=True)
        e = jnp.exp(s - m)
        p = e * pl.reciprocal(jnp.sum(e, axis=-1, keepdims=True), approx=True)
        ctx = jnp.einsum('hqk,hkd->hqd', p.astype(MM_DT), v.astype(MM_DT),
                         preferred_element_type=jnp.float32)     # (H, Sp, hd)

        # Merge heads along lanes, then a single (D, D) out-projection.
        ctx = jnp.concatenate([ctx[i] for i in range(HEADS)], axis=-1)   # (Sp, D)
        x = x + _mm(ctx, wproj_ref[layer]) + bproj_ref[layer]

        # ------------------------------ MLP -------------------------------
        y = _layernorm(x, ln2w_ref[layer], ln2b_ref[layer])
        y = _mm(y, fc1w_ref[layer]) + fc1b_ref[layer]            # (Sp, 4D)
        # TODO(synk): PyTorch nn.GELU defaults to exact erf; tanh approximation kept
        # for guaranteed Mosaic lowering (~1e-3 relative difference).
        y = jax.nn.gelu(y, approximate=True)
        y = _mm(y, fc2w_ref[layer]) + fc2b_ref[layer]            # (Sp, D)
        x = x + y

    o_ref[...] = _layernorm(x, lnfw_ref[...], lnfb_ref[...])


PARAM_ORDER = ("ln1w", "ln1b", "wqkv", "bqkv", "wproj", "bproj",
               "ln2w", "ln2b", "fc1w", "fc1b", "fc2w", "fc2b", "lnfw", "lnfb")

# Weights: whole array resident in VMEM for the duration of the call, not pipelined
# (no useless double-buffering across the batch grid).
_VMEM_RESIDENT = pl.BlockSpec(memory_space=pltpu.MemorySpace.VMEM)


@jax.jit
def vit_forward(x, cls_token, params):
    B, S, d = x.shape
    S1 = S + 1                        # + cls token
    Sp = ((S1 + 7) // 8) * 8          # pad rows to a sublane multiple (8)

    # cls-token concat (torch.cat([class_token.expand(n,-1,-1), x], dim=1)), padded
    # with zero rows so every in-kernel vreg op is full-sublane.
    cls = jnp.broadcast_to(cls_token.reshape(1, 1, d), (B, 1, d))
    tok = jnp.concatenate([cls, x], axis=1)                      # (B, S1, D)
    tok = jnp.pad(tok, ((0, 0), (0, Sp - S1), (0, 0)))           # (B, Sp, D)
    tok = tok.reshape(B * Sp, d).astype(jnp.float32)

    weights = [params[k] for k in PARAM_ORDER]

    # Advisory cost estimate so XLA schedules the surrounding glue around the call.
    mxu_flops_per_seq_layer = (2 * Sp * d * (3 * d)            # qkv
                               + 2 * 2 * Sp * Sp * d           # scores + ctx
                               + 2 * Sp * d * d                # out-proj
                               + 2 * 2 * Sp * d * (MLP_RATIO * d))  # fc1 + fc2
    flops = int(B * NUM_LAYERS * mxu_flops_per_seq_layer)
    transcendentals = int(B * NUM_LAYERS *
                          (HEADS * Sp * Sp + HEADS * Sp + Sp * MLP_RATIO * d))
    w_bytes = sum(int(np.prod(w.shape)) * w.dtype.itemsize for w in weights)
    bytes_accessed = int(2 * B * Sp * d * 4 + w_bytes)

    kernel = functools.partial(vit_stack_kernel, n_real=S1)
    out = pl.pallas_call(
        kernel,
        out_shape=jax.ShapeDtypeStruct((B * Sp, d), jnp.float32),
        grid=(B,),
        in_specs=[pl.BlockSpec((Sp, d), lambda b: (b, 0))] +
                 [_VMEM_RESIDENT] * len(weights),
        out_specs=pl.BlockSpec((Sp, d), lambda b: (b, 0)),
        compiler_params=pltpu.CompilerParams(
            dimension_semantics=("parallel",)),   # batch shards across TCs on v7x
        cost_estimate=pl.CostEstimate(
            flops=flops, transcendentals=transcendentals,
            bytes_accessed=bytes_accessed),
    )(tok, *weights)
    return out.reshape(B, Sp, d)[:, :S1, :]


def make_params(key):
    """Synthetic per-layer-stacked parameters.

    Checkpoint-mapping note: PyTorch nn.Linear stores (out, in); here weights are
    (in, out), so a loader must transpose qkv/proj/fc weights.  The qkv output
    columns are ordered [q | k | v], each head-major (h0..hH x head_dim) — the
    timm/MAE layout, so the transposed stacked qkv weight drops straight in.
    """
    hidden = MLP_RATIO * D
    L = NUM_LAYERS
    ks = jax.random.split(key, 8)

    def init(k, shape, dt):
        return (jax.random.normal(k, shape, jnp.float32) * 0.02).astype(dt)

    return dict(
        ln1w=jnp.ones((L, 1, D), jnp.float32),
        ln1b=jnp.zeros((L, 1, D), jnp.float32),
        wqkv=init(ks[0], (L, D, 3 * D), MM_DT),
        bqkv=init(ks[1], (L, 1, 3 * D), jnp.float32),
        wproj=init(ks[2], (L, D, D), MM_DT),
        bproj=init(ks[3], (L, 1, D), jnp.float32),
        ln2w=jnp.ones((L, 1, D), jnp.float32),
        ln2b=jnp.zeros((L, 1, D), jnp.float32),
        fc1w=init(ks[4], (L, D, hidden), MM_DT),
        fc1b=init(ks[5], (L, 1, hidden), jnp.float32),
        fc2w=init(ks[6], (L, hidden, D), MM_DT),
        fc2b=init(ks[7], (L, 1, D), jnp.float32),
        lnfw=jnp.ones((1, D), jnp.float32),
        lnfb=jnp.zeros((1, D), jnp.float32),
    )


if __name__ == "__main__":
    key = jax.random.PRNGKey(0)
    B, S = 2, 8
    kx, kcls, kp = jax.random.split(key, 3)

    x = jax.random.normal(kx, (B, S, D), jnp.float32)
    cls_token = jax.random.normal(kcls, (1, 1, D), jnp.float32) * 0.02
    params = make_params(kp)

    out = vit_forward(x, cls_token, params)
    jax.block_until_ready(out)
    assert out.shape == (B, S + 1, D), out.shape
    assert bool(jnp.all(jnp.isfinite(out)))
    print("KERNEL_OK")
</pallas_src>

<mosaic_0001>
module attributes {stable_mosaic.version = 11 : i64} {
  func.func @vit_stack_kernel(%arg0: i32, %arg1: memref<16x32xf32, #tpu.memory_space<vmem>>, %arg2: memref<2x1x32xf32, #tpu.memory_space<vmem>>, %arg3: memref<2x1x32xf32, #tpu.memory_space<vmem>>, %arg4: memref<2x32x96xbf16, #tpu.memory_space<vmem>>, %arg5: memref<2x1x96xf32, #tpu.memory_space<vmem>>, %arg6: memref<2x32x32xbf16, #tpu.memory_space<vmem>>, %arg7: memref<2x1x32xf32, #tpu.memory_space<vmem>>, %arg8: memref<2x1x32xf32, #tpu.memory_space<vmem>>, %arg9: memref<2x1x32xf32, #tpu.memory_space<vmem>>, %arg10: memref<2x32x128xbf16, #tpu.memory_space<vmem>>, %arg11: memref<2x1x128xf32, #tpu.memory_space<vmem>>, %arg12: memref<2x128x32xbf16, #tpu.memory_space<vmem>>, %arg13: memref<2x1x32xf32, #tpu.memory_space<vmem>>, %arg14: memref<1x32xf32, #tpu.memory_space<vmem>>, %arg15: memref<1x32xf32, #tpu.memory_space<vmem>>, %arg16: memref<16x32xf32, #tpu.memory_space<vmem>>) attributes {dimension_semantics = [#tpu.dimension_semantics<parallel>], iteration_bounds = array<i64: 2>, scalar_prefetch = 0 : i64, scratch_operands = 0 : i64, tpu.core_type = #tpu.core_type<tc>, window_params = [{transform_indices = @transform_0, window_bounds = array<i64: 16, 32>}, {pipeline_mode = #tpu.pipeline_mode<synchronous>, transform_indices = @transform_1, window_bounds = array<i64: 2, 1, 32>}, {pipeline_mode = #tpu.pipeline_mode<synchronous>, transform_indices = @transform_2, window_bounds = array<i64: 2, 1, 32>}, {pipeline_mode = #tpu.pipeline_mode<synchronous>, transform_indices = @transform_3, window_bounds = array<i64: 2, 32, 96>}, {pipeline_mode = #tpu.pipeline_mode<synchronous>, transform_indices = @transform_4, window_bounds = array<i64: 2, 1, 96>}, {pipeline_mode = #tpu.pipeline_mode<synchronous>, transform_indices = @transform_5, window_bounds = array<i64: 2, 32, 32>}, {pipeline_mode = #tpu.pipeline_mode<synchronous>, transform_indices = @transform_6, window_bounds = array<i64: 2, 1, 32>}, {pipeline_mode = #tpu.pipeline_mode<synchronous>, transform_indices = @transform_7, window_bounds = array<i64: 2, 1, 32>}, {pipeline_mode = #tpu.pipeline_mode<synchronous>, transform_indices = @transform_8, window_bounds = array<i64: 2, 1, 32>}, {pipeline_mode = #tpu.pipeline_mode<synchronous>, transform_indices = @transform_9, window_bounds = array<i64: 2, 32, 128>}, {pipeline_mode = #tpu.pipeline_mode<synchronous>, transform_indices = @transform_10, window_bounds = array<i64: 2, 1, 128>}, {pipeline_mode = #tpu.pipeline_mode<synchronous>, transform_indices = @transform_11, window_bounds = array<i64: 2, 128, 32>}, {pipeline_mode = #tpu.pipeline_mode<synchronous>, transform_indices = @transform_12, window_bounds = array<i64: 2, 1, 32>}, {pipeline_mode = #tpu.pipeline_mode<synchronous>, transform_indices = @transform_13, window_bounds = array<i64: 1, 32>}, {pipeline_mode = #tpu.pipeline_mode<synchronous>, transform_indices = @transform_14, window_bounds = array<i64: 1, 32>}, {transform_indices = @transform_15, window_bounds = array<i64: 16, 32>}]} {
    %c0 = arith.constant 0 : index
    %c0_0 = arith.constant 0 : index
    %0 = vector.load %arg1[%c0, %c0_0] : memref<16x32xf32, #tpu.memory_space<vmem>>, vector<16x32xf32>
    %1 = tpu.iota {dimensions = array<i32: 2>} : vector<1x1x16xi32>
    %c9_i32 = arith.constant 9 : i32
    %2 = vector.broadcast %c9_i32 : i32 to vector<1x1x16xi32>
    %3 = arith.cmpi slt, %1, %2 : vector<1x1x16xi32>
    %cst = arith.constant 0.000000e+00 : f32
    %cst_1 = arith.constant -1.000000e+30 : f32
    %4 = vector.broadcast %cst : f32 to vector<1x1x16xf32>
    %5 = vector.broadcast %cst_1 : f32 to vector<1x1x16xf32>
    %6 = arith.select %3, %4, %5 : vector<1x1x16xi1>, vector<1x1x16xf32>
    %c0_2 = arith.constant 0 : index
    %c0_3 = arith.constant 0 : index
    %c0_4 = arith.constant 0 : index
    %7 = vector.load %arg2[%c0_2, %c0_3, %c0_4] : memref<2x1x32xf32, #tpu.memory_space<vmem>>, vector<1x1x32xf32>
    %8 = vector.shape_cast %7 : vector<1x1x32xf32> to vector<1x32xf32>
    %c0_5 = arith.constant 0 : index
    %c0_6 = arith.constant 0 : index
    %c0_7 = arith.constant 0 : index
    %9 = vector.load %arg3[%c0_5, %c0_6, %c0_7] : memref<2x1x32xf32, #tpu.memory_space<vmem>>, vector<1x1x32xf32>
    %10 = vector.shape_cast %9 : vector<1x1x32xf32> to vector<1x32xf32>
    %cst_8 = arith.constant dense<0.000000e+00> : vector<16xf32>
    %11 = vector.multi_reduction <add>, %0, %cst_8 [1] : vector<16x32xf32> to vector<16xf32>
    %12 = vector.shape_cast %11 : vector<16xf32> to vector<16x1xf32>
    %cst_9 = arith.constant 3.200000e+01 : f32
    %13 = vector.broadcast %cst_9 : f32 to vector<16x1xf32>
    %14 = arith.divf %12, %13 : vector<16x1xf32>
    %15 = vector.broadcast %14 : vector<16x1xf32> to vector<16x32xf32>
    %16 = arith.subf %0, %15 : vector<16x32xf32>
    %17 = arith.mulf %16, %16 : vector<16x32xf32>
    %cst_10 = arith.constant dense<0.000000e+00> : vector<16xf32>
    %18 = vector.multi_reduction <add>, %17, %cst_10 [1] : vector<16x32xf32> to vector<16xf32>
    %19 = vector.shape_cast %18 : vector<16xf32> to vector<16x1xf32>
    %cst_11 = arith.constant 3.200000e+01 : f32
    %20 = vector.broadcast %cst_11 : f32 to vector<16x1xf32>
    %21 = arith.divf %19, %20 : vector<16x1xf32>
    %cst_12 = arith.constant 9.99999997E-7 : f32
    %22 = vector.broadcast %cst_12 : f32 to vector<16x1xf32>
    %23 = arith.addf %21, %22 : vector<16x1xf32>
    %24 = math.rsqrt %23 : vector<16x1xf32>
    %25 = vector.broadcast %24 : vector<16x1xf32> to vector<16x32xf32>
    %26 = arith.mulf %16, %25 : vector<16x32xf32>
    %27 = vector.broadcast %8 : vector<1x32xf32> to vector<16x32xf32>
    %28 = arith.mulf %26, %27 : vector<16x32xf32>
    %29 = vector.broadcast %10 : vector<1x32xf32> to vector<16x32xf32>
    %30 = arith.addf %28, %29 : vector<16x32xf32>
    %c0_13 = arith.constant 0 : index
    %c0_14 = arith.constant 0 : index
    %c0_15 = arith.constant 0 : index
    %31 = vector.load %arg4[%c0_13, %c0_14, %c0_15] : memref<2x32x96xbf16, #tpu.memory_space<vmem>>, vector<1x32x96xbf16>
    %32 = vector.shape_cast %31 : vector<1x32x96xbf16> to vector<32x96xbf16>
    %33 = arith.truncf %30 : vector<16x32xf32> to vector<16x32xbf16>
    %cst_16 = arith.constant dense<0.000000e+00> : vector<16x96xf32>
    %34 = tpu.matmul %33, %32, %cst_16 {dimension_numbers = #tpu.dot_dimension_numbers<[1], [0], [0], [1], [0, 0, 1, 1], [], []>} : vector<16x32xbf16>, vector<32x96xbf16>, vector<16x96xf32> -> vector<16x96xf32>
    %c0_17 = arith.constant 0 : index
    %c0_18 = arith.constant 0 : index
    %c0_19 = arith.constant 0 : index
    %35 = vector.load %arg5[%c0_17, %c0_18, %c0_19] : memref<2x1x96xf32, #tpu.memory_space<vmem>>, vector<1x1x96xf32>
    %36 = vector.shape_cast %35 : vector<1x1x96xf32> to vector<1x96xf32>
    %37 = vector.broadcast %36 : vector<1x96xf32> to vector<16x96xf32>
    %38 = arith.addf %34, %37 : vector<16x96xf32>
    %39 = vector.extract_strided_slice %38 {offsets = [0, 0], sizes = [16, 8], strides = [1, 1]} : vector<16x96xf32> to vector<16x8xf32>
    %40 = vector.extract_strided_slice %38 {offsets = [0, 8], sizes = [16, 8], strides = [1, 1]} : vector<16x96xf32> to vector<16x8xf32>
    %41 = vector.extract_strided_slice %38 {offsets = [0, 16], sizes = [16, 8], strides = [1, 1]} : vector<16x96xf32> to vector<16x8xf32>
    %42 = vector.extract_strided_slice %38 {offsets = [0, 24], sizes = [16, 8], strides = [1, 1]} : vector<16x96xf32> to vector<16x8xf32>
    %43 = vector.shape_cast %39 : vector<16x8xf32> to vector<1x16x8xf32>
    %44 = vector.shape_cast %40 : vector<16x8xf32> to vector<1x16x8xf32>
    %45 = vector.shape_cast %41 : vector<16x8xf32> to vector<1x16x8xf32>
    %46 = vector.shape_cast %42 : vector<16x8xf32> to vector<1x16x8xf32>
    %47 = tpu.concatenate %43, %44, %45, %46 in 0 : vector<1x16x8xf32>, vector<1x16x8xf32>, vector<1x16x8xf32>, vector<1x16x8xf32> -> vector<4x16x8xf32>
    %48 = vector.extract_strided_slice %38 {offsets = [0, 32], sizes = [16, 8], strides = [1, 1]} : vector<16x96xf32> to vector<16x8xf32>
    %49 = vector.extract_strided_slice %38 {offsets = [0, 40], sizes = [16, 8], strides = [1, 1]} : vector<16x96xf32> to vector<16x8xf32>
    %50 = vector.extract_strided_slice %38 {offsets = [0, 48], sizes = [16, 8], strides = [1, 1]} : vector<16x96xf32> to vector<16x8xf32>
    %51 = vector.extract_strided_slice %38 {offsets = [0, 56], sizes = [16, 8], strides = [1, 1]} : vector<16x96xf32> to vector<16x8xf32>
    %52 = vector.shape_cast %48 : vector<16x8xf32> to vector<1x16x8xf32>
    %53 = vector.shape_cast %49 : vector<16x8xf32> to vector<1x16x8xf32>
    %54 = vector.shape_cast %50 : vector<16x8xf32> to vector<1x16x8xf32>
    %55 = vector.shape_cast %51 : vector<16x8xf32> to vector<1x16x8xf32>
    %56 = tpu.concatenate %52, %53, %54, %55 in 0 : vector<1x16x8xf32>, vector<1x16x8xf32>, vector<1x16x8xf32>, vector<1x16x8xf32> -> vector<4x16x8xf32>
    %57 = vector.extract_strided_slice %38 {offsets = [0, 64], sizes = [16, 8], strides = [1, 1]} : vector<16x96xf32> to vector<16x8xf32>
    %58 = vector.extract_strided_slice %38 {offsets = [0, 72], sizes = [16, 8], strides = [1, 1]} : vector<16x96xf32> to vector<16x8xf32>
    %59 = vector.extract_strided_slice %38 {offsets = [0, 80], sizes = [16, 8], strides = [1, 1]} : vector<16x96xf32> to vector<16x8xf32>
    %60 = vector.extract_strided_slice %38 {offsets = [0, 88], sizes = [16, 8], strides = [1, 1]} : vector<16x96xf32> to vector<16x8xf32>
    %61 = vector.shape_cast %57 : vector<16x8xf32> to vector<1x16x8xf32>
    %62 = vector.shape_cast %58 : vector<16x8xf32> to vector<1x16x8xf32>
    %63 = vector.shape_cast %59 : vector<16x8xf32> to vector<1x16x8xf32>
    %64 = vector.shape_cast %60 : vector<16x8xf32> to vector<1x16x8xf32>
    %65 = tpu.concatenate %61, %62, %63, %64 in 0 : vector<1x16x8xf32>, vector<1x16x8xf32>, vector<1x16x8xf32>, vector<1x16x8xf32> -> vector<4x16x8xf32>
    %66 = arith.truncf %47 : vector<4x16x8xf32> to vector<4x16x8xbf16>
    %67 = arith.truncf %56 : vector<4x16x8xf32> to vector<4x16x8xbf16>
    "tpu.trace_start"() <{level = 10 : i32, message = "hqd,hkd->hqk"}> : () -> ()
    %cst_20 = arith.constant dense<0.000000e+00> : vector<4x16x16xf32>
    %68 = tpu.matmul %66, %67, %cst_20 {dimension_numbers = #tpu.dot_dimension_numbers<[2], [2], [1], [1], [0, 0, 0, 1, 1, 1], [0], [0]>} : vector<4x16x8xbf16>, vector<4x16x8xbf16>, vector<4x16x16xf32> -> vector<4x16x16xf32>
    "tpu.trace_stop"() : () -> ()
    %cst_21 = arith.constant 0.353553385 : f32
    %69 = vector.broadcast %cst_21 : f32 to vector<4x16x16xf32>
    %70 = arith.mulf %68, %69 : vector<4x16x16xf32>
    %71 = vector.broadcast %6 : vector<1x1x16xf32> to vector<4x16x16xf32>
    %72 = arith.addf %70, %71 : vector<4x16x16xf32>
    %cst_22 = arith.constant dense<0xFF800000> : vector<4x16xf32>
    %73 = vector.multi_reduction <maximumf>, %72, %cst_22 [2] : vector<4x16x16xf32> to vector<4x16xf32>
    %74 = vector.shape_cast %73 : vector<4x16xf32> to vector<4x16x1xf32>
    %75 = vector.broadcast %74 : vector<4x16x1xf32> to vector<4x16x16xf32>
    %76 = arith.subf %72, %75 : vector<4x16x16xf32>
    %77 = math.exp %76 : vector<4x16x16xf32>
    %cst_23 = arith.constant dense<0.000000e+00> : vector<4x16xf32>
    %78 = vector.multi_reduction <add>, %77, %cst_23 [2] : vector<4x16x16xf32> to vector<4x16xf32>
    %79 = vector.shape_cast %78 : vector<4x16xf32> to vector<4x16x1xf32>
    %80 = tpu.reciprocal %79 {approx = true} : vector<4x16x1xf32> -> vector<4x16x1xf32>
    %81 = vector.broadcast %80 : vector<4x16x1xf32> to vector<4x16x16xf32>
    %82 = arith.mulf %77, %81 : vector<4x16x16xf32>
    %83 = arith.truncf %82 : vector<4x16x16xf32> to vector<4x16x16xbf16>
    %84 = arith.truncf %65 : vector<4x16x8xf32> to vector<4x16x8xbf16>
    "tpu.trace_start"() <{level = 10 : i32, message = "hqk,hkd->hqd"}> : () -> ()
    %cst_24 = arith.constant dense<0.000000e+00> : vector<4x16x8xf32>
    %85 = tpu.matmul %83, %84, %cst_24 {dimension_numbers = #tpu.dot_dimension_numbers<[2], [1], [1], [2], [0, 0, 0, 1, 1, 2], [0], [0]>} : vector<4x16x16xbf16>, vector<4x16x8xbf16>, vector<4x16x8xf32> -> vector<4x16x8xf32>
    "tpu.trace_stop"() : () -> ()
    %86 = vector.extract_strided_slice %85 {offsets = [0, 0, 0], sizes = [1, 16, 8], strides = [1, 1, 1]} : vector<4x16x8xf32> to vector<1x16x8xf32>
    %87 = vector.shape_cast %86 : vector<1x16x8xf32> to vector<16x8xf32>
    %88 = vector.extract_strided_slice %85 {offsets = [1, 0, 0], sizes = [1, 16, 8], strides = [1, 1, 1]} : vector<4x16x8xf32> to vector<1x16x8xf32>
    %89 = vector.shape_cast %88 : vector<1x16x8xf32> to vector<16x8xf32>
    %90 = vector.extract_strided_slice %85 {offsets = [2, 0, 0], sizes = [1, 16, 8], strides = [1, 1, 1]} : vector<4x16x8xf32> to vector<1x16x8xf32>
    %91 = vector.shape_cast %90 : vector<1x16x8xf32> to vector<16x8xf32>
    %92 = vector.extract_strided_slice %85 {offsets = [3, 0, 0], sizes = [1, 16, 8], strides = [1, 1, 1]} : vector<4x16x8xf32> to vector<1x16x8xf32>
    %93 = vector.shape_cast %92 : vector<1x16x8xf32> to vector<16x8xf32>
    %94 = tpu.concatenate %87, %89, %91, %93 in 1 : vector<16x8xf32>, vector<16x8xf32>, vector<16x8xf32>, vector<16x8xf32> -> vector<16x32xf32>
    %c0_25 = arith.constant 0 : index
    %c0_26 = arith.constant 0 : index
    %c0_27 = arith.constant 0 : index
    %95 = vector.load %arg6[%c0_25, %c0_26, %c0_27] : memref<2x32x32xbf16, #tpu.memory_space<vmem>>, vector<1x32x32xbf16>
    %96 = vector.shape_cast %95 : vector<1x32x32xbf16> to vector<32x32xbf16>
    %97 = arith.truncf %94 : vector<16x32xf32> to vector<16x32xbf16>
    %cst_28 = arith.constant dense<0.000000e+00> : vector<16x32xf32>
    %98 = tpu.matmul %97, %96, %cst_28 {dimension_numbers = #tpu.dot_dimension_numbers<[1], [0], [0], [1], [0, 0, 1, 1], [], []>} : vector<16x32xbf16>, vector<32x32xbf16>, vector<16x32xf32> -> vector<16x32xf32>
    %99 = arith.addf %0, %98 : vector<16x32xf32>
    %c0_29 = arith.constant 0 : index
    %c0_30 = arith.constant 0 : index
    %c0_31 = arith.constant 0 : index
    %100 = vector.load %arg7[%c0_29, %c0_30, %c0_31] : memref<2x1x32xf32, #tpu.memory_space<vmem>>, vector<1x1x32xf32>
    %101 = vector.shape_cast %100 : vector<1x1x32xf32> to vector<1x32xf32>
    %102 = vector.broadcast %101 : vector<1x32xf32> to vector<16x32xf32>
    %103 = arith.addf %99, %102 : vector<16x32xf32>
    %c0_32 = arith.constant 0 : index
    %c0_33 = arith.constant 0 : index
    %c0_34 = arith.constant 0 : index
    %104 = vector.load %arg8[%c0_32, %c0_33, %c0_34] : memref<2x1x32xf32, #tpu.memory_space<vmem>>, vector<1x1x32xf32>
    %105 = vector.shape_cast %104 : vector<1x1x32xf32> to vector<1x32xf32>
    %c0_35 = arith.constant 0 : index
    %c0_36 = arith.constant 0 : index
    %c0_37 = arith.constant 0 : index
    %106 = vector.load %arg9[%c0_35, %c0_36, %c0_37] : memref<2x1x32xf32, #tpu.memory_space<vmem>>, vector<1x1x32xf32>
    %107 = vector.shape_cast %106 : vector<1x1x32xf32> to vector<1x32xf32>
    %cst_38 = arith.constant dense<0.000000e+00> : vector<16xf32>
    %108 = vector.multi_reduction <add>, %103, %cst_38 [1] : vector<16x32xf32> to vector<16xf32>
    %109 = vector.shape_cast %108 : vector<16xf32> to vector<16x1xf32>
    %cst_39 = arith.constant 3.200000e+01 : f32
    %110 = vector.broadcast %cst_39 : f32 to vector<16x1xf32>
    %111 = arith.divf %109, %110 : vector<16x1xf32>
    %112 = vector.broadcast %111 : vector<16x1xf32> to vector<16x32xf32>
    %113 = arith.subf %103, %112 : vector<16x32xf32>
    %114 = arith.mulf %113, %113 : vector<16x32xf32>
    %cst_40 = arith.constant dense<0.000000e+00> : vector<16xf32>
    %115 = vector.multi_reduction <add>, %114, %cst_40 [1] : vector<16x32xf32> to vector<16xf32>
    %116 = vector.shape_cast %115 : vector<16xf32> to vector<16x1xf32>
    %cst_41 = arith.constant 3.200000e+01 : f32
    %117 = vector.broadcast %cst_41 : f32 to vector<16x1xf32>
    %118 = arith.divf %116, %117 : vector<16x1xf32>
    %cst_42 = arith.constant 9.99999997E-7 : f32
    %119 = vector.broadcast %cst_42 : f32 to vector<16x1xf32>
    %120 = arith.addf %118, %119 : vector<16x1xf32>
    %121 = math.rsqrt %120 : vector<16x1xf32>
    %122 = vector.broadcast %121 : vector<16x1xf32> to vector<16x32xf32>
    %123 = arith.mulf %113, %122 : vector<16x32xf32>
    %124 = vector.broadcast %105 : vector<1x32xf32> to vector<16x32xf32>
    %125 = arith.mulf %123, %124 : vector<16x32xf32>
    %126 = vector.broadcast %107 : vector<1x32xf32> to vector<16x32xf32>
    %127 = arith.addf %125, %126 : vector<16x32xf32>
    %c0_43 = arith.constant 0 : index
    %c0_44 = arith.constant 0 : index
    %c0_45 = arith.constant 0 : index
    %128 = vector.load %arg10[%c0_43, %c0_44, %c0_45] : memref<2x32x128xbf16, #tpu.memory_space<vmem>>, vector<1x32x128xbf16>
    %129 = vector.shape_cast %128 : vector<1x32x128xbf16> to vector<32x128xbf16>
    %130 = arith.truncf %127 : vector<16x32xf32> to vector<16x32xbf16>
    %cst_46 = arith.constant dense<0.000000e+00> : vector<16x128xf32>
    %131 = tpu.matmul %130, %129, %cst_46 {dimension_numbers = #tpu.dot_dimension_numbers<[1], [0], [0], [1], [0, 0, 1, 1], [], []>} : vector<16x32xbf16>, vector<32x128xbf16>, vector<16x128xf32> -> vector<16x128xf32>
    %c0_47 = arith.constant 0 : index
    %c0_48 = arith.constant 0 : index
    %c0_49 = arith.constant 0 : index
    %132 = vector.load %arg11[%c0_47, %c0_48, %c0_49] : memref<2x1x128xf32, #tpu.memory_space<vmem>>, vector<1x1x128xf32>
    %133 = vector.shape_cast %132 : vector<1x1x128xf32> to vector<1x128xf32>
    %134 = vector.broadcast %133 : vector<1x128xf32> to vector<16x128xf32>
    %135 = arith.addf %131, %134 : vector<16x128xf32>
    %136 = arith.mulf %135, %135 : vector<16x128xf32>
    %137 = arith.mulf %135, %136 : vector<16x128xf32>
    %cst_50 = arith.constant 4.471500e-02 : f32
    %138 = vector.broadcast %cst_50 : f32 to vector<16x128xf32>
    %139 = arith.mulf %138, %137 : vector<16x128xf32>
    %140 = arith.addf %135, %139 : vector<16x128xf32>
    %cst_51 = arith.constant 0.797884583 : f32
    %141 = vector.broadcast %cst_51 : f32 to vector<16x128xf32>
    %142 = arith.mulf %141, %140 : vector<16x128xf32>
    %143 = math.tanh %142 : vector<16x128xf32>
    %cst_52 = arith.constant 1.000000e+00 : f32
    %144 = vector.broadcast %cst_52 : f32 to vector<16x128xf32>
    %145 = arith.addf %144, %143 : vector<16x128xf32>
    %cst_53 = arith.constant 5.000000e-01 : f32
    %146 = vector.broadcast %cst_53 : f32 to vector<16x128xf32>
    %147 = arith.mulf %146, %145 : vector<16x128xf32>
    %148 = arith.mulf %135, %147 : vector<16x128xf32>
    %c0_54 = arith.constant 0 : index
    %c0_55 = arith.constant 0 : index
    %c0_56 = arith.constant 0 : index
    %149 = vector.load %arg12[%c0_54, %c0_55, %c0_56] : memref<2x128x32xbf16, #tpu.memory_space<vmem>>, vector<1x128x32xbf16>
    %150 = vector.shape_cast %149 : vector<1x128x32xbf16> to vector<128x32xbf16>
    %151 = arith.truncf %148 : vector<16x128xf32> to vector<16x128xbf16>
    %cst_57 = arith.constant dense<0.000000e+00> : vector<16x32xf32>
    %152 = tpu.matmul %151, %150, %cst_57 {dimension_numbers = #tpu.dot_dimension_numbers<[1], [0], [0], [1], [0, 0, 1, 1], [], []>} : vector<16x128xbf16>, vector<128x32xbf16>, vector<16x32xf32> -> vector<16x32xf32>
    %c0_58 = arith.constant 0 : index
    %c0_59 = arith.constant 0 : index
    %c0_60 = arith.constant 0 : index
    %153 = vector.load %arg13[%c0_58, %c0_59, %c0_60] : memref<2x1x32xf32, #tpu.memory_space<vmem>>, vector<1x1x32xf32>
    %154 = vector.shape_cast %153 : vector<1x1x32xf32> to vector<1x32xf32>
    %155 = vector.broadcast %154 : vector<1x32xf32> to vector<16x32xf32>
    %156 = arith.addf %152, %155 : vector<16x32xf32>
    %157 = arith.addf %103, %156 : vector<16x32xf32>
    %c1 = arith.constant 1 : index
    %c0_61 = arith.constant 0 : index
    %c0_62 = arith.constant 0 : index
    %158 = vector.load %arg2[%c1, %c0_61, %c0_62] : memref<2x1x32xf32, #tpu.memory_space<vmem>>, vector<1x1x32xf32>
    %159 = vector.shape_cast %158 : vector<1x1x32xf32> to vector<1x32xf32>
    %c1_63 = arith.constant 1 : index
    %c0_64 = arith.constant 0 : index
    %c0_65 = arith.constant 0 : index
    %160 = vector.load %arg3[%c1_63, %c0_64, %c0_65] : memref<2x1x32xf32, #tpu.memory_space<vmem>>, vector<1x1x32xf32>
    %161 = vector.shape_cast %160 : vector<1x1x32xf32> to vector<1x32xf32>
    %cst_66 = arith.constant dense<0.000000e+00> : vector<16xf32>
    %162 = vector.multi_reduction <add>, %157, %cst_66 [1] : vector<16x32xf32> to vector<16xf32>
    %163 = vector.shape_cast %162 : vector<16xf32> to vector<16x1xf32>
    %cst_67 = arith.constant 3.200000e+01 : f32
    %164 = vector.broadcast %cst_67 : f32 to vector<16x1xf32>
    %165 = arith.divf %163, %164 : vector<16x1xf32>
    %166 = vector.broadcast %165 : vector<16x1xf32> to vector<16x32xf32>
    %167 = arith.subf %157, %166 : vector<16x32xf32>
    %168 = arith.mulf %167, %167 : vector<16x32xf32>
    %cst_68 = arith.constant dense<0.000000e+00> : vector<16xf32>
    %169 = vector.multi_reduction <add>, %168, %cst_68 [1] : vector<16x32xf32> to vector<16xf32>
    %170 = vector.shape_cast %169 : vector<16xf32> to vector<16x1xf32>
    %cst_69 = arith.constant 3.200000e+01 : f32
    %171 = vector.broadcast %cst_69 : f32 to vector<16x1xf32>
    %172 = arith.divf %170, %171 : vector<16x1xf32>
    %cst_70 = arith.constant 9.99999997E-7 : f32
    %173 = vector.broadcast %cst_70 : f32 to vector<16x1xf32>
    %174 = arith.addf %172, %173 : vector<16x1xf32>
    %175 = math.rsqrt %174 : vector<16x1xf32>
    %176 = vector.broadcast %175 : vector<16x1xf32> to vector<16x32xf32>
    %177 = arith.mulf %167, %176 : vector<16x32xf32>
    %178 = vector.broadcast %159 : vector<1x32xf32> to vector<16x32xf32>
    %179 = arith.mulf %177, %178 : vector<16x32xf32>
    %180 = vector.broadcast %161 : vector<1x32xf32> to vector<16x32xf32>
    %181 = arith.addf %179, %180 : vector<16x32xf32>
    %c1_71 = arith.constant 1 : index
    %c0_72 = arith.constant 0 : index
    %c0_73 = arith.constant 0 : index
    %182 = vector.load %arg4[%c1_71, %c0_72, %c0_73] : memref<2x32x96xbf16, #tpu.memory_space<vmem>>, vector<1x32x96xbf16>
    %183 = vector.shape_cast %182 : vector<1x32x96xbf16> to vector<32x96xbf16>
    %184 = arith.truncf %181 : vector<16x32xf32> to vector<16x32xbf16>
    %cst_74 = arith.constant dense<0.000000e+00> : vector<16x96xf32>
    %185 = tpu.matmul %184, %183, %cst_74 {dimension_numbers = #tpu.dot_dimension_numbers<[1], [0], [0], [1], [0, 0, 1, 1], [], []>} : vector<16x32xbf16>, vector<32x96xbf16>, vector<16x96xf32> -> vector<16x96xf32>
    %c1_75 = arith.constant 1 : index
    %c0_76 = arith.constant 0 : index
    %c0_77 = arith.constant 0 : index
    %186 = vector.load %arg5[%c1_75, %c0_76, %c0_77] : memref<2x1x96xf32, #tpu.memory_space<vmem>>, vector<1x1x96xf32>
    %187 = vector.shape_cast %186 : vector<1x1x96xf32> to vector<1x96xf32>
    %188 = vector.broadcast %187 : vector<1x96xf32> to vector<16x96xf32>
    %189 = arith.addf %185, %188 : vector<16x96xf32>
    %190 = vector.extract_strided_slice %189 {offsets = [0, 0], sizes = [16, 8], strides = [1, 1]} : vector<16x96xf32> to vector<16x8xf32>
    %191 = vector.extract_strided_slice %189 {offsets = [0, 8], sizes = [16, 8], strides = [1, 1]} : vector<16x96xf32> to vector<16x8xf32>
    %192 = vector.extract_strided_slice %189 {offsets = [0, 16], sizes = [16, 8], strides = [1, 1]} : vector<16x96xf32> to vector<16x8xf32>
    %193 = vector.extract_strided_slice %189 {offsets = [0, 24], sizes = [16, 8], strides = [1, 1]} : vector<16x96xf32> to vector<16x8xf32>
    %194 = vector.shape_cast %190 : vector<16x8xf32> to vector<1x16x8xf32>
    %195 = vector.shape_cast %191 : vector<16x8xf32> to vector<1x16x8xf32>
    %196 = vector.shape_cast %192 : vector<16x8xf32> to vector<1x16x8xf32>
    %197 = vector.shape_cast %193 : vector<16x8xf32> to vector<1x16x8xf32>
    %198 = tpu.concatenate %194, %195, %196, %197 in 0 : vector<1x16x8xf32>, vector<1x16x8xf32>, vector<1x16x8xf32>, vector<1x16x8xf32> -> vector<4x16x8xf32>
    %199 = vector.extract_strided_slice %189 {offsets = [0, 32], sizes = [16, 8], strides = [1, 1]} : vector<16x96xf32> to vector<16x8xf32>
    %200 = vector.extract_strided_slice %189 {offsets = [0, 40], sizes = [16, 8], strides = [1, 1]} : vector<16x96xf32> to vector<16x8xf32>
    %201 = vector.extract_strided_slice %189 {offsets = [0, 48], sizes = [16, 8], strides = [1, 1]} : vector<16x96xf32> to vector<16x8xf32>
    %202 = vector.extract_strided_slice %189 {offsets = [0, 56], sizes = [16, 8], strides = [1, 1]} : vector<16x96xf32> to vector<16x8xf32>
    %203 = vector.shape_cast %199 : vector<16x8xf32> to vector<1x16x8xf32>
    %204 = vector.shape_cast %200 : vector<16x8xf32> to vector<1x16x8xf32>
    %205 = vector.shape_cast %201 : vector<16x8xf32> to vector<1x16x8xf32>
    %206 = vector.shape_cast %202 : vector<16x8xf32> to vector<1x16x8xf32>
    %207 = tpu.concatenate %203, %204, %205, %206 in 0 : vector<1x16x8xf32>, vector<1x16x8xf32>, vector<1x16x8xf32>, vector<1x16x8xf32> -> vector<4x16x8xf32>
    %208 = vector.extract_strided_slice %189 {offsets = [0, 64], sizes = [16, 8], strides = [1, 1]} : vector<16x96xf32> to vector<16x8xf32>
    %209 = vector.extract_strided_slice %189 {offsets = [0, 72], sizes = [16, 8], strides = [1, 1]} : vector<16x96xf32> to vector<16x8xf32>
    %210 = vector.extract_strided_slice %189 {offsets = [0, 80], sizes = [16, 8], strides = [1, 1]} : vector<16x96xf32> to vector<16x8xf32>
    %211 = vector.extract_strided_slice %189 {offsets = [0, 88], sizes = [16, 8], strides = [1, 1]} : vector<16x96xf32> to vector<16x8xf32>
    %212 = vector.shape_cast %208 : vector<16x8xf32> to vector<1x16x8xf32>
    %213 = vector.shape_cast %209 : vector<16x8xf32> to vector<1x16x8xf32>
    %214 = vector.shape_cast %210 : vector<16x8xf32> to vector<1x16x8xf32>
    %215 = vector.shape_cast %211 : vector<16x8xf32> to vector<1x16x8xf32>
    %216 = tpu.concatenate %212, %213, %214, %215 in 0 : vector<1x16x8xf32>, vector<1x16x8xf32>, vector<1x16x8xf32>, vector<1x16x8xf32> -> vector<4x16x8xf32>
    %217 = arith.truncf %198 : vector<4x16x8xf32> to vector<4x16x8xbf16>
    %218 = arith.truncf %207 : vector<4x16x8xf32> to vector<4x16x8xbf16>
    "tpu.trace_start"() <{level = 10 : i32, message = "hqd,hkd->hqk"}> : () -> ()
    %cst_78 = arith.constant dense<0.000000e+00> : vector<4x16x16xf32>
    %219 = tpu.matmul %217, %218, %cst_78 {dimension_numbers = #tpu.dot_dimension_numbers<[2], [2], [1], [1], [0, 0, 0, 1, 1, 1], [0], [0]>} : vector<4x16x8xbf16>, vector<4x16x8xbf16>, vector<4x16x16xf32> -> vector<4x16x16xf32>
    "tpu.trace_stop"() : () -> ()
    %cst_79 = arith.constant 0.353553385 : f32
    %220 = vector.broadcast %cst_79 : f32 to vector<4x16x16xf32>
    %221 = arith.mulf %219, %220 : vector<4x16x16xf32>
    %222 = vector.broadcast %6 : vector<1x1x16xf32> to vector<4x16x16xf32>
    %223 = arith.addf %221, %222 : vector<4x16x16xf32>
    %cst_80 = arith.constant dense<0xFF800000> : vector<4x16xf32>
    %224 = vector.multi_reduction <maximumf>, %223, %cst_80 [2] : vector<4x16x16xf32> to vector<4x16xf32>
    %225 = vector.shape_cast %224 : vector<4x16xf32> to vector<4x16x1xf32>
    %226 = vector.broadcast %225 : vector<4x16x1xf32> to vector<4x16x16xf32>
    %227 = arith.subf %223, %226 : vector<4x16x16xf32>
    %228 = math.exp %227 : vector<4x16x16xf32>
    %cst_81 = arith.constant dense<0.000000e+00> : vector<4x16xf32>
    %229 = vector.multi_reduction <add>, %228, %cst_81 [2] : vector<4x16x16xf32> to vector<4x16xf32>
    %230 = vector.shape_cast %229 : vector<4x16xf32> to vector<4x16x1xf32>
    %231 = tpu.reciprocal %230 {approx = true} : vector<4x16x1xf32> -> vector<4x16x1xf32>
    %232 = vector.broadcast %231 : vector<4x16x1xf32> to vector<4x16x16xf32>
    %233 = arith.mulf %228, %232 : vector<4x16x16xf32>
    %234 = arith.truncf %233 : vector<4x16x16xf32> to vector<4x16x16xbf16>
    %235 = arith.truncf %216 : vector<4x16x8xf32> to vector<4x16x8xbf16>
    "tpu.trace_start"() <{level = 10 : i32, message = "hqk,hkd->hqd"}> : () -> ()
    %cst_82 = arith.constant dense<0.000000e+00> : vector<4x16x8xf32>
    %236 = tpu.matmul %234, %235, %cst_82 {dimension_numbers = #tpu.dot_dimension_numbers<[2], [1], [1], [2], [0, 0, 0, 1, 1, 2], [0], [0]>} : vector<4x16x16xbf16>, vector<4x16x8xbf16>, vector<4x16x8xf32> -> vector<4x16x8xf32>
    "tpu.trace_stop"() : () -> ()
    %237 = vector.extract_strided_slice %236 {offsets = [0, 0, 0], sizes = [1, 16, 8], strides = [1, 1, 1]} : vector<4x16x8xf32> to vector<1x16x8xf32>
    %238 = vector.shape_cast %237 : vector<1x16x8xf32> to vector<16x8xf32>
    %239 = vector.extract_strided_slice %236 {offsets = [1, 0, 0], sizes = [1, 16, 8], strides = [1, 1, 1]} : vector<4x16x8xf32> to vector<1x16x8xf32>
    %240 = vector.shape_cast %239 : vector<1x16x8xf32> to vector<16x8xf32>
    %241 = vector.extract_strided_slice %236 {offsets = [2, 0, 0], sizes = [1, 16, 8], strides = [1, 1, 1]} : vector<4x16x8xf32> to vector<1x16x8xf32>
    %242 = vector.shape_cast %241 : vector<1x16x8xf32> to vector<16x8xf32>
    %243 = vector.extract_strided_slice %236 {offsets = [3, 0, 0], sizes = [1, 16, 8], strides = [1, 1, 1]} : vector<4x16x8xf32> to vector<1x16x8xf32>
    %244 = vector.shape_cast %243 : vector<1x16x8xf32> to vector<16x8xf32>
    %245 = tpu.concatenate %238, %240, %242, %244 in 1 : vector<16x8xf32>, vector<16x8xf32>, vector<16x8xf32>, vector<16x8xf32> -> vector<16x32xf32>
    %c1_83 = arith.constant 1 : index
    %c0_84 = arith.constant 0 : index
    %c0_85 = arith.constant 0 : index
    %246 = vector.load %arg6[%c1_83, %c0_84, %c0_85] : memref<2x32x32xbf16, #tpu.memory_space<vmem>>, vector<1x32x32xbf16>
    %247 = vector.shape_cast %246 : vector<1x32x32xbf16> to vector<32x32xbf16>
    %248 = arith.truncf %245 : vector<16x32xf32> to vector<16x32xbf16>
    %cst_86 = arith.constant dense<0.000000e+00> : vector<16x32xf32>
    %249 = tpu.matmul %248, %247, %cst_86 {dimension_numbers = #tpu.dot_dimension_numbers<[1], [0], [0], [1], [0, 0, 1, 1], [], []>} : vector<16x32xbf16>, vector<32x32xbf16>, vector<16x32xf32> -> vector<16x32xf32>
    %250 = arith.addf %157, %249 : vector<16x32xf32>
    %c1_87 = arith.constant 1 : index
    %c0_88 = arith.constant 0 : index
    %c0_89 = arith.constant 0 : index
    %251 = vector.load %arg7[%c1_87, %c0_88, %c0_89] : memref<2x1x32xf32, #tpu.memory_space<vmem>>, vector<1x1x32xf32>
    %252 = vector.shape_cast %251 : vector<1x1x32xf32> to vector<1x32xf32>
    %253 = vector.broadcast %252 : vector<1x32xf32> to vector<16x32xf32>
    %254 = arith.addf %250, %253 : vector<16x32xf32>
    %c1_90 = arith.constant 1 : index
    %c0_91 = arith.constant 0 : index
    %c0_92 = arith.constant 0 : index
    %255 = vector.load %arg8[%c1_90, %c0_91, %c0_92] : memref<2x1x32xf32, #tpu.memory_space<vmem>>, vector<1x1x32xf32>
    %256 = vector.shape_cast %255 : vector<1x1x32xf32> to vector<1x32xf32>
    %c1_93 = arith.constant 1 : index
    %c0_94 = arith.constant 0 : index
    %c0_95 = arith.constant 0 : index
    %257 = vector.load %arg9[%c1_93, %c0_94, %c0_95] : memref<2x1x32xf32, #tpu.memory_space<vmem>>, vector<1x1x32xf32>
    %258 = vector.shape_cast %257 : vector<1x1x32xf32> to vector<1x32xf32>
    %cst_96 = arith.constant dense<0.000000e+00> : vector<16xf32>
    %259 = vector.multi_reduction <add>, %254, %cst_96 [1] : vector<16x32xf32> to vector<16xf32>
    %260 = vector.shape_cast %259 : vector<16xf32> to vector<16x1xf32>
    %cst_97 = arith.constant 3.200000e+01 : f32
    %261 = vector.broadcast %cst_97 : f32 to vector<16x1xf32>
    %262 = arith.divf %260, %261 : vector<16x1xf32>
    %263 = vector.broadcast %262 : vector<16x1xf32> to vector<16x32xf32>
    %264 = arith.subf %254, %263 : vector<16x32xf32>
    %265 = arith.mulf %264, %264 : vector<16x32xf32>
    %cst_98 = arith.constant dense<0.000000e+00> : vector<16xf32>
    %266 = vector.multi_reduction <add>, %265, %cst_98 [1] : vector<16x32xf32> to vector<16xf32>
    %267 = vector.shape_cast %266 : vector<16xf32> to vector<16x1xf32>
    %cst_99 = arith.constant 3.200000e+01 : f32
    %268 = vector.broadcast %cst_99 : f32 to vector<16x1xf32>
    %269 = arith.divf %267, %268 : vector<16x1xf32>
    %cst_100 = arith.constant 9.99999997E-7 : f32
    %270 = vector.broadcast %cst_100 : f32 to vector<16x1xf32>
    %271 = arith.addf %269, %270 : vector<16x1xf32>
    %272 = math.rsqrt %271 : vector<16x1xf32>
    %273 = vector.broadcast %272 : vector<16x1xf32> to vector<16x32xf32>
    %274 = arith.mulf %264, %273 : vector<16x32xf32>
    %275 = vector.broadcast %256 : vector<1x32xf32> to vector<16x32xf32>
    %276 = arith.mulf %274, %275 : vector<16x32xf32>
    %277 = vector.broadcast %258 : vector<1x32xf32> to vector<16x32xf32>
    %278 = arith.addf %276, %277 : vector<16x32xf32>
    %c1_101 = arith.constant 1 : index
    %c0_102 = arith.constant 0 : index
    %c0_103 = arith.constant 0 : index
    %279 = vector.load %arg10[%c1_101, %c0_102, %c0_103] : memref<2x32x128xbf16, #tpu.memory_space<vmem>>, vector<1x32x128xbf16>
    %280 = vector.shape_cast %279 : vector<1x32x128xbf16> to vector<32x128xbf16>
    %281 = arith.truncf %278 : vector<16x32xf32> to vector<16x32xbf16>
    %cst_104 = arith.constant dense<0.000000e+00> : vector<16x128xf32>
    %282 = tpu.matmul %281, %280, %cst_104 {dimension_numbers = #tpu.dot_dimension_numbers<[1], [0], [0], [1], [0, 0, 1, 1], [], []>} : vector<16x32xbf16>, vector<32x128xbf16>, vector<16x128xf32> -> vector<16x128xf32>
    %c1_105 = arith.constant 1 : index
    %c0_106 = arith.constant 0 : index
    %c0_107 = arith.constant 0 : index
    %283 = vector.load %arg11[%c1_105, %c0_106, %c0_107] : memref<2x1x128xf32, #tpu.memory_space<vmem>>, vector<1x1x128xf32>
    %284 = vector.shape_cast %283 : vector<1x1x128xf32> to vector<1x128xf32>
    %285 = vector.broadcast %284 : vector<1x128xf32> to vector<16x128xf32>
    %286 = arith.addf %282, %285 : vector<16x128xf32>
    %287 = arith.mulf %286, %286 : vector<16x128xf32>
    %288 = arith.mulf %286, %287 : vector<16x128xf32>
    %cst_108 = arith.constant 4.471500e-02 : f32
    %289 = vector.broadcast %cst_108 : f32 to vector<16x128xf32>
    %290 = arith.mulf %289, %288 : vector<16x128xf32>
    %291 = arith.addf %286, %290 : vector<16x128xf32>
    %cst_109 = arith.constant 0.797884583 : f32
    %292 = vector.broadcast %cst_109 : f32 to vector<16x128xf32>
    %293 = arith.mulf %292, %291 : vector<16x128xf32>
    %294 = math.tanh %293 : vector<16x128xf32>
    %cst_110 = arith.constant 1.000000e+00 : f32
    %295 = vector.broadcast %cst_110 : f32 to vector<16x128xf32>
    %296 = arith.addf %295, %294 : vector<16x128xf32>
    %cst_111 = arith.constant 5.000000e-01 : f32
    %297 = vector.broadcast %cst_111 : f32 to vector<16x128xf32>
    %298 = arith.mulf %297, %296 : vector<16x128xf32>
    %299 = arith.mulf %286, %298 : vector<16x128xf32>
    %c1_112 = arith.constant 1 : index
    %c0_113 = arith.constant 0 : index
    %c0_114 = arith.constant 0 : index
    %300 = vector.load %arg12[%c1_112, %c0_113, %c0_114] : memref<2x128x32xbf16, #tpu.memory_space<vmem>>, vector<1x128x32xbf16>
    %301 = vector.shape_cast %300 : vector<1x128x32xbf16> to vector<128x32xbf16>
    %302 = arith.truncf %299 : vector<16x128xf32> to vector<16x128xbf16>
    %cst_115 = arith.constant dense<0.000000e+00> : vector<16x32xf32>
    %303 = tpu.matmul %302, %301, %cst_115 {dimension_numbers = #tpu.dot_dimension_numbers<[1], [0], [0], [1], [0, 0, 1, 1], [], []>} : vector<16x128xbf16>, vector<128x32xbf16>, vector<16x32xf32> -> vector<16x32xf32>
    %c1_116 = arith.constant 1 : index
    %c0_117 = arith.constant 0 : index
    %c0_118 = arith.constant 0 : index
    %304 = vector.load %arg13[%c1_116, %c0_117, %c0_118] : memref<2x1x32xf32, #tpu.memory_space<vmem>>, vector<1x1x32xf32>
    %305 = vector.shape_cast %304 : vector<1x1x32xf32> to vector<1x32xf32>
    %306 = vector.broadcast %305 : vector<1x32xf32> to vector<16x32xf32>
    %307 = arith.addf %303, %306 : vector<16x32xf32>
    %308 = arith.addf %254, %307 : vector<16x32xf32>
    %c0_119 = arith.constant 0 : index
    %c0_120 = arith.constant 0 : index
    %309 = vector.load %arg14[%c0_119, %c0_120] : memref<1x32xf32, #tpu.memory_space<vmem>>, vector<1x32xf32>
    %c0_121 = arith.constant 0 : index
    %c0_122 = arith.constant 0 : index
    %310 = vector.load %arg15[%c0_121, %c0_122] : memref<1x32xf32, #tpu.memory_space<vmem>>, vector<1x32xf32>
    %cst_123 = arith.constant dense<0.000000e+00> : vector<16xf32>
    %311 = vector.multi_reduction <add>, %308, %cst_123 [1] : vector<16x32xf32> to vector<16xf32>
    %312 = vector.shape_cast %311 : vector<16xf32> to vector<16x1xf32>
    %cst_124 = arith.constant 3.200000e+01 : f32
    %313 = vector.broadcast %cst_124 : f32 to vector<16x1xf32>
    %314 = arith.divf %312, %313 : vector<16x1xf32>
    %315 = vector.broadcast %314 : vector<16x1xf32> to vector<16x32xf32>
    %316 = arith.subf %308, %315 : vector<16x32xf32>
    %317 = arith.mulf %316, %316 : vector<16x32xf32>
    %cst_125 = arith.constant dense<0.000000e+00> : vector<16xf32>
    %318 = vector.multi_reduction <add>, %317, %cst_125 [1] : vector<16x32xf32> to vector<16xf32>
    %319 = vector.shape_cast %318 : vector<16xf32> to vector<16x1xf32>
    %cst_126 = arith.constant 3.200000e+01 : f32
    %320 = vector.broadcast %cst_126 : f32 to vector<16x1xf32>
    %321 = arith.divf %319, %320 : vector<16x1xf32>
    %cst_127 = arith.constant 9.99999997E-7 : f32
    %322 = vector.broadcast %cst_127 : f32 to vector<16x1xf32>
    %323 = arith.addf %321, %322 : vector<16x1xf32>
    %324 = math.rsqrt %323 : vector<16x1xf32>
    %325 = vector.broadcast %324 : vector<16x1xf32> to vector<16x32xf32>
    %326 = arith.mulf %316, %325 : vector<16x32xf32>
    %327 = vector.broadcast %309 : vector<1x32xf32> to vector<16x32xf32>
    %328 = arith.mulf %326, %327 : vector<16x32xf32>
    %329 = vector.broadcast %310 : vector<1x32xf32> to vector<16x32xf32>
    %330 = arith.addf %328, %329 : vector<16x32xf32>
    %c0_128 = arith.constant 0 : index
    %c0_129 = arith.constant 0 : index
    %331 = vector.load %arg16[%c0_128, %c0_129] : memref<16x32xf32, #tpu.memory_space<vmem>>, vector<16x32xf32>
    tpu.vector_store %arg16[%c0_128, %c0_129], %330 {strides = array<i32>} : memref<16x32xf32, #tpu.memory_space<vmem>>, vector<16x32xf32>,
    return
  }
  func.func @transform_0(%arg0: i32) -> (i32, i32) {
    %c0_i32 = arith.constant 0 : i32
    %c0_i32_0 = arith.constant 0 : i32
    return %arg0, %c0_i32 : i32, i32
  }
  func.func @transform_1(%arg0: i32) -> (i32, i32, i32) {
    %c0_i32 = arith.constant 0 : i32
    %c0_i32_0 = arith.constant 0 : i32
    %c0_i32_1 = arith.constant 0 : i32
    %c0_i32_2 = arith.constant 0 : i32
    return %c0_i32, %c0_i32_0, %c0_i32_1 : i32, i32, i32
  }
  func.func @transform_2(%arg0: i32) -> (i32, i32, i32) {
    %c0_i32 = arith.constant 0 : i32
    %c0_i32_0 = arith.constant 0 : i32
    %c0_i32_1 = arith.constant 0 : i32
    %c0_i32_2 = arith.constant 0 : i32
    return %c0_i32, %c0_i32_0, %c0_i32_1 : i32, i32, i32
  }
  func.func @transform_3(%arg0: i32) -> (i32, i32, i32) {
    %c0_i32 = arith.constant 0 : i32
    %c0_i32_0 = arith.constant 0 : i32
    %c0_i32_1 = arith.constant 0 : i32
    %c0_i32_2 = arith.constant 0 : i32
    return %c0_i32, %c0_i32_0, %c0_i32_1 : i32, i32, i32
  }
  func.func @transform_4(%arg0: i32) -> (i32, i32, i32) {
    %c0_i32 = arith.constant 0 : i32
    %c0_i32_0 = arith.constant 0 : i32
    %c0_i32_1 = arith.constant 0 : i32
    %c0_i32_2 = arith.constant 0 : i32
    return %c0_i32, %c0_i32_0, %c0_i32_1 : i32, i32, i32
  }
  func.func @transform_5(%arg0: i32) -> (i32, i32, i32) {
    %c0_i32 = arith.constant 0 : i32
    %c0_i32_0 = arith.constant 0 : i32
    %c0_i32_1 = arith.constant 0 : i32
    %c0_i32_2 = arith.constant 0 : i32
    return %c0_i32, %c0_i32_0, %c0_i32_1 : i32, i32, i32
  }
  func.func @transform_6(%arg0: i32) -> (i32, i32, i32) {
    %c0_i32 = arith.constant 0 : i32
    %c0_i32_0 = arith.constant 0 : i32
    %c0_i32_1 = arith.constant 0 : i32
    %c0_i32_2 = arith.constant 0 : i32
    return %c0_i32, %c0_i32_0, %c0_i32_1 : i32, i32, i32
  }
  func.func @transform_7(%arg0: i32) -> (i32, i32, i32) {
    %c0_i32 = arith.constant 0 : i32
    %c0_i32_0 = arith.constant 0 : i32
    %c0_i32_1 = arith.constant 0 : i32
    %c0_i32_2 = arith.constant 0 : i32
    return %c0_i32, %c0_i32_0, %c0_i32_1 : i32, i32, i32
  }
  func.func @transform_8(%arg0: i32) -> (i32, i32, i32) {
    %c0_i32 = arith.constant 0 : i32
    %c0_i32_0 = arith.constant 0 : i32
    %c0_i32_1 = arith.constant 0 : i32
    %c0_i32_2 = arith.constant 0 : i32
    return %c0_i32, %c0_i32_0, %c0_i32_1 : i32, i32, i32
  }
  func.func @transform_9(%arg0: i32) -> (i32, i32, i32) {
    %c0_i32 = arith.constant 0 : i32
    %c0_i32_0 = arith.constant 0 : i32
    %c0_i32_1 = arith.constant 0 : i32
    %c0_i32_2 = arith.constant 0 : i32
    return %c0_i32, %c0_i32_0, %c0_i32_1 : i32, i32, i32
  }
  func.func @transform_10(%arg0: i32) -> (i32, i32, i32) {
    %c0_i32 = arith.constant 0 : i32
    %c0_i32_0 = arith.constant 0 : i32
    %c0_i32_1 = arith.constant 0 : i32
    %c0_i32_2 = arith.constant 0 : i32
    return %c0_i32, %c0_i32_0, %c0_i32_1 : i32, i32, i32
  }
  func.func @transform_11(%arg0: i32) -> (i32, i32, i32) {
    %c0_i32 = arith.constant 0 : i32
    %c0_i32_0 = arith.constant 0 : i32
    %c0_i32_1 = arith.constant 0 : i32
    %c0_i32_2 = arith.constant 0 : i32
    return %c0_i32, %c0_i32_0, %c0_i32_1 : i32, i32, i32
  }
  func.func @transform_12(%arg0: i32) -> (i32, i32, i32) {
    %c0_i32 = arith.constant 0 : i32
    %c0_i32_0 = arith.constant 0 : i32
    %c0_i32_1 = arith.constant 0 : i32
    %c0_i32_2 = arith.constant 0 : i32
    return %c0_i32, %c0_i32_0, %c0_i32_1 : i32, i32, i32
  }
  func.func @transform_13(%arg0: i32) -> (i32, i32) {
    %c0_i32 = arith.constant 0 : i32
    %c0_i32_0 = arith.constant 0 : i32
    %c0_i32_1 = arith.constant 0 : i32
    return %c0_i32, %c0_i32_0 : i32, i32
  }
  func.func @transform_14(%arg0: i32) -> (i32, i32) {
    %c0_i32 = arith.constant 0 : i32
    %c0_i32_0 = arith.constant 0 : i32
    %c0_i32_1 = arith.constant 0 : i32
    return %c0_i32, %c0_i32_0 : i32, i32
  }
  func.func @transform_15(%arg0: i32) -> (i32, i32) {
    %c0_i32 = arith.constant 0 : i32
    %c0_i32_0 = arith.constant 0 : i32
    return %arg0, %c0_i32 : i32, i32
  }
}

</mosaic_0001>

<bundles_post_ra>
// kernel: vit_forward.1
= control target key start
LH: loop header
LB: loop body
LE: loop exit
PB: predicated region body
PF: predicated region fallthrough
CT: control target
= control target key end

     0   :  { %s2561_s18 = smov 0   ;;  %s2999_s0 = inlined_call_operand.vmem [shape: f32[32,32], index: 0, kind: input, shape index: {}]   ;;  %s3000_s1 = inlined_call_operand.vmem [shape: f32[2,1,32], index: 1, kind: input, shape index: {}]   ;;  %s3001_s2 = inlined_call_operand.vmem [shape: f32[2,1,32], index: 2, kind: input, shape index: {}]   ;;  %s3002_s3 = inlined_call_operand.vmem [shape: bf16[2,32,96], index: 3, kind: input, shape index: {}]   ;;  %s3003_s4 = inlined_call_operand.vmem [shape: f32[2,1,96], index: 4, kind: input, shape index: {}]   ;;  %s3004_s5 = inlined_call_operand.vmem [shape: bf16[2,32,32], index: 5, kind: input, shape index: {}]   ;;  %s3005_s6 = inlined_call_operand.vmem [shape: f32[2,1,32], index: 6, kind: input, shape index: {}]   ;;  %s3006_s7 = inlined_call_operand.vmem [shape: f32[2,1,32], index: 7, kind: input, shape index: {}]   ;;  %s3007_s8 = inlined_call_operand.vmem [shape: f32[2,1,32], index: 8, kind: input, shape index: {}]   ;;  %s3008_s9 = inlined_call_operand.vmem [shape: bf16[2,32,128], index: 9, kind: input, shape index: {}]   ;;  %s3009_s10 = inlined_call_operand.vmem [shape: f32[2,1,128], index: 10, kind: input, shape index: {}]   ;;  %s3010_s11 = inlined_call_operand.vmem [shape: bf16[2,128,32], index: 11, kind: input, shape index: {}]   ;;  %s3011_s12 = inlined_call_operand.vmem [shape: f32[2,1,32], index: 12, kind: input, shape index: {}]   ;;  %s3012_s13 = inlined_call_operand.vmem [shape: f32[1,32], index: 13, kind: input, shape index: {}]   ;;  %s3013_s14 = inlined_call_operand.vmem [shape: f32[1,32], index: 14, kind: input, shape index: {}]   ;;  %s3014_s15 = inlined_call_operand.vmem [shape: f32[32,32], index: 15, kind: output, shape index: {}]  }
   0x1 LB: > { %s2064_s19 = sadd.s32 4294967295, %s2469_s18   ;;  %p2068_p0 = scmp.ge.s32.totalorder %s2469_s18, 1  ;;  %s2469_s18 = sphi %s2561_s18, %s25_s18  }
   0x2   : > { %p438_p1 = scmp.lt.s32.totalorder %s2469_s18, 3 }
   0x4   : > { %p439_p2 = pnand %p2068_p0, %p438_p1 }
   0x5   : > { %s2069_s20 = sshll.u32 (!%p439_p2), %s2064_s19, 1  ;;  %s2472_s23 = smov (!%p439_p2), 104  }
   0x6   : > { %442 = sbr.rel (%p439_p2) target bundleno = 4379 (0x111b), region = 80  ;;  %p487_p3 = scmp.lt.s32.totalorder (!%p439_p2), %s2069_s20, 3 }
   0x7   : > { %s2474_s25 = smov (!%p439_p2), 112   ;;  %s3021_s26 = smov (!%p439_p2), 96  }
   0x8   : > { %s3019_s27 = smov (!%p439_p2), 64   ;;  %s3017_s28 = smov (!%p439_p2), 8  }
   0x9   : > { %s3018_s29 = smov (!%p439_p2), 16   ;;  %s3016_s30 = smov (!%p439_p2), 24  }
   0xa   : > { %s3027_s19 = smov (!%p439_p2), 24  }
   0xb   : > { %s3030_s20 = smov (!%p487_p3, %s2069_s20), 3  ;;  %vm507_vm0 = vcmask 261120   ;;  %v2471_v4 = vmov 32.0   ;;  %v2246_v21 = vld [vmem:[%s3002_s3 + $0x8] sm:$0xff]  ;;  %v2245_v23 = vld [vmem:[%s3002_s3] sm:$0xff]  ;;  %vm642_vm8 = vcmask 64512  }
   0xc   : > { %s3015_s21 = sshll.u32 %s3030_s20, 3  ;;  %2369 = vrcp.f32 %v2471_v4  ;;  %599 = vmatpush.bf16.msra.mxu1 %v2246_v21  ;;  %v2351_v42 = vld [vmem:[%s3000_s1] ss:$0 sm:$0xff]  ;;  %vm760_vm10 = vcmask 130048   ;;  %vm985_vm11 = vcmask 195584  }
   0xd   : > { %s490_s24 = scalar_lea.vmem %s2999_s0, %s3015_s21  ;;  %v2352_v47 = vld [vmem:[%s3001_s2] ss:$0 sm:$0xff]  ;;  %s3023_s21 = smov 96  }
   0xe   : > { %v2577_v0 = vld [vmem:[%s490_s24] sm:$0xff]  ;;  %v2581_v2 = vld [vmem:[%s490_s24 + $0x8] sm:$0xff]  ;;  %s2473_s24 = smov 120  }
   0xf   : > { %v508_v1 = vsel %vm507_vm0, %v2577_v0, 0.0  ;;  %v511_v3 = vsel %vm507_vm0, %v2581_v2, 0.0  ;;  %v2353_v53 = vld [vmem:[%s3003_s4] ss:$0 sm:$0xff] }
  0x10   : > { %509 = vadd.xlane.f32.xlu0 %v508_v1  ;;  %600 = vmatpush.bf16.msra.mxu1 %v2245_v23 }
  0x12   : > { %v2370_v5 = vpop.eup %2369 }
  0x13   : > { %v515_v6 = vmul.f32 32.0, %v2370_v5  ;;  %vm519_vm1 = vweird.f32 %v2370_v5 }
  0x15   : > { %v516_v7 = vsub.f32 1.0, %v515_v6 }
  0x17   : > { %v517_v8 = vmul.f32 %v2370_v5, %v516_v7 }
  0x18   : > { %512 = vadd.xlane.f32.xlu0 %v511_v3 }
  0x19   : > { %v518_v9 = vadd.f32 %v2370_v5, %v517_v8 }
  0x1b   : > { %v2585_v10 = vsel %vm519_vm1, %v2370_v5, %v518_v9 }
  0x83   : > { %v510_v11 = vpop.xlane.xlu0 %509 }
  0x84   : > { %v521_v12 = vmul.f32 %v2585_v10, %v510_v11 }
  0x86   : > { %v523_v13 = vsub.f32 %v2577_v0, %v521_v12 }
  0x88   : > { %v525_v14 = vmul.f32 %v523_v13, %v523_v13 }
  0x8a   : > { %v527_v15 = vsel %vm507_vm0, %v525_v14, 0.0 }
  0x8b   : > { %528 = vadd.xlane.f32.xlu1 %v527_v15  ;;  %v513_v16 = vpop.xlane.xlu0 %512 }
  0x8c   : > { %v522_v17 = vmul.f32 %v2585_v10, %v513_v16 }
  0x8e   : > { %v524_v18 = vsub.f32 %v2581_v2, %v522_v17 }
  0x90   : > { %v526_v19 = vmul.f32 %v524_v18, %v524_v18 }
  0x92   : > { %v530_v20 = vsel %vm507_vm0, %v526_v19, 0.0 }
  0x93   : > { %531 = vadd.xlane.f32.xlu1 %v530_v20 }
  0xfe   : > { %v529_v22 = vpop.xlane.xlu1 %528 }
  0xff   : > { %v533_v24 = vmul.f32 %v529_v22, %v2585_v10 }
 0x101   : > { %v535_v25 = vadd.f32 1e-06, %v533_v24 }
 0x103   : > { %2371 = vrsqrt.f32 %v535_v25  ;;  %vm543_vm3 = vweird.f32 %v535_v25 }
 0x106   : > { %v532_v26 = vpop.xlane.xlu1 %531 }
 0x107   : > { %v534_v27 = vmul.f32 %v532_v26, %v2585_v10 }
 0x109   : > { %v2372_v28 = vpop.eup %2371  ;;  %v536_v29 = vadd.f32 1e-06, %v534_v27 }
 0x10a   : > { %v538_v30 = vmul.f32 %v2372_v28, %v535_v25  ;;  %vm544_vm2 = vweird.f32 %v2372_v28 }
 0x10b   : > { %2373 = vrsqrt.f32 %v536_v29  ;;  %vm545_vm4 = vmor %vm543_vm3, %vm544_vm2  ;;  %vm553_vm6 = vweird.f32 %v536_v29 }
 0x10c   : > { %v539_v31 = vmul.f32 %v2372_v28, %v538_v30 }
 0x10e   : > { %v540_v32 = vmul.f32 0.5, %v539_v31 }
 0x110   : > { %v541_v33 = vsub.f32 1.5, %v540_v32 }
 0x111   : > { %v2374_v34 = vpop.eup %2373 }
 0x112   : > { %v542_v35 = vmul.f32 %v2372_v28, %v541_v33  ;;  %v548_v36 = vmul.f32 %v2374_v34, %v536_v29  ;;  %vm554_vm5 = vweird.f32 %v2374_v34 }
 0x113   : > { %vm555_vm7 = vmor %vm553_vm6, %vm554_vm5 }
 0x114   : > { %v549_v37 = vmul.f32 %v2374_v34, %v548_v36  ;;  %v546_v38 = vsel %vm545_vm4, %v2372_v28, %v542_v35 }
 0x115   : > { %v557_v41 = vmul.f32 %v546_v38, %v523_v13 }
 0x116   : > { %v550_v39 = vmul.f32 0.5, %v549_v37  ;;  %v2476_v37 = vmov -1e+30  }
 0x117   : > { %v562_v46 = vmul.f32 %v2351_v42, %v557_v41 }
 0x118   : > { %v551_v40 = vsub.f32 1.5, %v550_v39 }
 0x119   : > { %v567_v49 = vadd.f32 %v2352_v47, %v562_v46 }
 0x11a   : > { %v552_v43 = vmul.f32 %v2374_v34, %v551_v40 }
 0x11c   : > { %v556_v44 = vsel %vm555_vm7, %v2374_v34, %v552_v43  ;;  %v501_v34 = vlaneseq }
 0x11d   : > { %v558_v45 = vmul.f32 %v556_v44, %v524_v18 }
 0x11e   : > { %v502_v35 = vand.u32 127, %v501_v34 }
 0x11f   : > { %v563_v48 = vmul.f32 %v2351_v42, %v558_v45 }
 0x120   : > { %vm503_vm9 = vcmp.lt.s32.totalorder %v502_v35, 9 }
 0x121   : > { %v568_v50 = vadd.f32 %v2352_v47, %v563_v48  ;;  %v2642_v38 = vsel %vm503_vm9, 0.0, %v2476_v37 }
 0x123   : > { %v573_v51 = vpack.c.bf16 %v568_v50, %v567_v49 }
 0x125   : > { %2081 = vmatmul.msk.bf16.vlgmr.msra.gmra.mxu1 %vm507_vm0, %v573_v51 }
 0x1a2   : > { %v602_v52 = vpop.f32.mrf.mxu1 }
 0x1a3   : > { %v603_v54 = vadd.f32 %v2353_v53, %v602_v52 }
 0x1a5   : > { %v627_v57 = vpack.c.bf16 %v603_v54, %v603_v54 }
 0x1a7   : > { %v637_v60 = vunpack.c.l.b16 %v627_v57 }
 0x1aa   : > { %v604_v55 = vpop.f32.mrf.mxu1 }
 0x1ab   : > { %v605_v56 = vadd.f32 %v2353_v53, %v604_v55 }
 0x1ad   : > { %v2301_v58 = vpack.i.bf16 %v605_v56, %v603_v54  ;;  %v628_v59 = vpack.c.bf16 %v605_v56, %v605_v56 }
 0x1af   : > { %2302 = vrot.lane.b32.xlu0 %v2301_v58, %s2472_s23  ;;  %2292 = vrot.lane.b32.xlu2 %v2301_v58, %s2473_s24  ;;  %v638_v61 = vunpack.c.l.b16 %v628_v59 }
 0x1b1   : > { %v2613_v62 = vpack.c.b16 %v638_v61, %v637_v60 }
 0x1b7   : > { %2297 = vrot.lane.b32.xlu2 %v2301_v58, %s2474_s25 }
 0x209   : > { %v2293_v63 = vpop.permute.xlu2 %2292 }
 0x20a   : > { %v2295_v1 = vunpack.i.h.bf16 %v2293_v63  ;;  %v2294_v3 = vunpack.i.l.bf16 %v2293_v63 }
 0x20c   : > { %v630_v4 = vpack.c.bf16 %v2295_v1, %v2295_v1  ;;  %v629_v5 = vpack.c.bf16 %v2294_v3, %v2294_v3 }
 0x20e   : > { %v666_v6 = vunpack.c.l.b16 %v630_v4  ;;  %v665_v7 = vunpack.c.l.b16 %v629_v5 }
 0x210   : > { %v2616_v8 = vpack.c.b16 %v666_v6, %v665_v7 }
 0x211   : > { %v2298_v9 = vpop.permute.xlu2 %2297 }
 0x212   : > { %v2300_v11 = vunpack.i.h.bf16 %v2298_v9  ;;  %v2299_v12 = vunpack.i.l.bf16 %v2298_v9  ;;  %668 = vrot.lane.b32.xlu1 %v2616_v8, %s3021_s26 }
 0x214   : > { %v632_v13 = vpack.c.bf16 %v2300_v11, %v2300_v11  ;;  %v631_v14 = vpack.c.bf16 %v2299_v12, %v2299_v12 }
 0x216   : > { %v693_v15 = vunpack.c.l.b16 %v632_v13  ;;  %v692_v16 = vunpack.c.l.b16 %v631_v14 }
 0x218   : > { %v2620_v17 = vpack.c.b16 %v693_v15, %v692_v16 }
 0x21a   : > { %695 = vrot.lane.b32.xlu2 %v2620_v17, %s3021_s26 }
 0x221   : > { %v2303_v18 = vpop.permute.xlu0 %2302 }
 0x222   : > { %v2305_v19 = vunpack.i.h.bf16 %v2303_v18  ;;  %v2304_v20 = vunpack.i.l.bf16 %v2303_v18 }
 0x224   : > { %v634_v21 = vpack.c.bf16 %v2305_v19, %v2305_v19  ;;  %v633_v22 = vpack.c.bf16 %v2304_v20, %v2304_v20 }
 0x226   : > { %v720_v23 = vunpack.c.l.b16 %v634_v21  ;;  %v719_v24 = vunpack.c.l.b16 %v633_v22 }
 0x228   : > { %v2624_v25 = vpack.c.b16 %v720_v23, %v719_v24 }
 0x22a   : > { %722 = vrot.lane.b32.xlu2 %v2624_v25, %s3021_s26 }
 0x232   : > { %640 = vrot.lane.b32.xlu2 %v2613_v62, %s3021_s26 }
 0x274   : > { %v696_v26 = vpop.permute.xlu2 %695 }
 0x275   : > { %v701_v27 = vsel %vm642_vm8, %v696_v26, 0 }
 0x276   : > { %710 = vmatpush.bf16.xpose.msra.mxu3 %v701_v27 }
 0x27d   : > { %2084 = vmatmul.msk.bf16.vlgmr.msra.gmra.mxu3 %vm642_vm8, %v2620_v17 }
 0x284   : > { %v723_v28 = vpop.permute.xlu2 %722  ;;  %v669_v29 = vpop.permute.xlu1 %668 }
 0x285   : > { %v674_v30 = vsel %vm642_vm8, %v669_v29, 0  ;;  %v728_v31 = vsel %vm642_vm8, %v723_v28, 0 }
 0x286   : > { %683 = vmatpush.bf16.xpose.msra.mxu2 %v674_v30  ;;  %737 = vmatpush.bf16.xpose.msra.mxu0 %v728_v31 }
 0x28c   : > { %v641_v32 = vpop.permute.xlu2 %640 }
 0x28d   : > { %2083 = vmatmul.msk.bf16.vlgmr.msra.gmra.mxu2 %vm642_vm8, %v2616_v8  ;;  %2085 = vmatmul.msk.bf16.vlgmr.msra.gmra.mxu0 %vm642_vm8, %v2624_v25  ;;  %v647_v33 = vsel %vm642_vm8, %v641_v32, 0 }
 0x28e   : > { %656 = vmatpush.bf16.xpose.msrb.mxu1 %v647_v33 }
 0x295   : > { %2082 = vmatmul.msk.bf16.vlgmr.msrb.gmra.mxu1 %vm642_vm8, %v2613_v62 }
 0x300   : > { %v712_v36 = vpop.f32.mrf.mxu3 }
 0x301   : > { %v748_v39 = vmul.f32 0.35355338, %v712_v36 }
 0x303   : > { %v756_v40 = vadd.f32 %v748_v39, %v2642_v38 }
 0x305   : > { %v773_v41 = vsel %vm760_vm10, %v756_v40, -inf }
 0x306   : > { %774 = vmax.xlane.f32.xlu1 %v773_v41 }
 0x308   : > { %v714_v45 = vpop.f32.mrf.mxu3 }
 0x309   : > { %v749_v49 = vmul.f32 0.35355338, %v714_v45 }
 0x30a   : > { %v739_v42 = vpop.f32.mrf.mxu0 }
 0x30b   : > { %v757_v56 = vadd.f32 %v749_v49, %v2642_v38  ;;  %v750_v58 = vmul.f32 0.35355338, %v739_v42 }
 0x30d   : > { %v776_v60 = vsel %vm760_vm10, %v757_v56, -inf  ;;  %v758_v63 = vadd.f32 %v750_v58, %v2642_v38 }
 0x30f   : > { %v779_v5 = vsel %vm760_vm10, %v758_v63, -inf }
 0x310   : > { %v685_v43 = vpop.f32.mrf.mxu2 }
 0x311   : > { %v746_v44 = vmul.f32 0.35355338, %v685_v43 }
 0x312   : > { %v741_v46 = vpop.f32.mrf.mxu0  ;;  %v658_v53 = vpop.f32.mrf.mxu1 }
 0x313   : > { %v751_v47 = vmul.f32 0.35355338, %v741_v46  ;;  %v754_v48 = vadd.f32 %v746_v44, %v2642_v38  ;;  %v744_v59 = vmul.f32 0.35355338, %v658_v53 }
 0x315   : > { %v767_v50 = vsel %vm760_vm10, %v754_v48, -inf  ;;  %v759_v51 = vadd.f32 %v751_v47, %v2642_v38  ;;  %v2656_v1 = vadd.f32 %v744_v59, %v2642_v38 }
 0x316   : > { %768 = vmax.xlane.f32.xlu0 %v767_v50 }
 0x317   : > { %v782_v52 = vsel %vm760_vm10, %v759_v51, -inf  ;;  %v761_v6 = vsel %vm760_vm10, %v2656_v1, -inf }
 0x318   : > { %783 = vmax.xlane.f32.xlu1 %v782_v52  ;;  %v687_v54 = vpop.f32.mrf.mxu2 }
 0x319   : > { %v747_v55 = vmul.f32 0.35355338, %v687_v54 }
 0x31a   : > { %v660_v3 = vpop.f32.mrf.mxu1 }
 0x31b   : > { %v755_v57 = vadd.f32 %v747_v55, %v2642_v38  ;;  %v745_v4 = vmul.f32 0.35355338, %v660_v3 }
 0x31d   : > { %v770_v61 = vsel %vm760_vm10, %v755_v57, -inf  ;;  %v753_v7 = vadd.f32 %v745_v4, %v2642_v38 }
 0x31e   : > { %777 = vmax.xlane.f32.xlu0 %v776_v60  ;;  %771 = vmax.xlane.f32.xlu2 %v770_v61 }
 0x31f   : > { %v764_v9 = vsel %vm760_vm10, %v753_v7, -inf }
 0x326   : > { %780 = vmax.xlane.f32.xlu2 %v779_v5  ;;  %762 = vmax.xlane.f32.xlu0 %v761_v6 }
 0x32e   : > { %765 = vmax.xlane.f32.xlu2 %v764_v9 }
 0x379   : > { %v775_v11 = vpop.xlane.xlu1 %774 }
 0x37a   : > { %v789_v12 = vsub.f32 %v756_v40, %v775_v11 }
 0x37c   : > { %v801_v13 = vmul.f32 1.442695, %v789_v12 }
 0x37e   : > { %2375 = vpow2.f32 %v801_v13 }
 0x384   : > { %v2663_v14 = vpop.eup %2375 }
 0x385   : > { %v821_v15 = vsel %vm760_vm10, %v2663_v14, 0.0 }
 0x386   : > { %822 = vadd.xlane.f32.xlu2 %v821_v15 }
 0x389   : > { %v769_v16 = vpop.xlane.xlu0 %768 }
 0x38a   : > { %v787_v18 = vsub.f32 %v754_v48, %v769_v16 }
 0x38b   : > { %v784_v19 = vpop.xlane.xlu1 %783 }
 0x38c   : > { %v797_v20 = vmul.f32 1.442695, %v787_v18  ;;  %v792_v21 = vsub.f32 %v759_v51, %v784_v19 }
 0x38e   : > { %2377 = vpow2.f32 %v797_v20  ;;  %v807_v22 = vmul.f32 1.442695, %v792_v21 }
 0x390   : > { %2379 = vpow2.f32 %v807_v22 }
 0x391   : > { %v778_v23 = vpop.xlane.xlu0 %777  ;;  %v772_v24 = vpop.xlane.xlu2 %771 }
 0x392   : > { %v790_v26 = vsub.f32 %v757_v56, %v778_v23  ;;  %v788_v36 = vsub.f32 %v755_v57, %v772_v24 }
 0x394   : > { %v2667_v27 = vpop.eup %2377  ;;  %v803_v28 = vmul.f32 1.442695, %v790_v26  ;;  %v799_v39 = vmul.f32 1.442695, %v788_v36 }
 0x395   : > { %v815_v29 = vsel %vm760_vm10, %v2667_v27, 0.0 }
 0x396   : > { %v2380_v30 = vpop.eup %2379  ;;  %2381 = vpow2.f32 %v803_v28  ;;  %816 = vadd.xlane.f32.xlu1 %v815_v29 }
 0x397   : > { %v830_v31 = vsel %vm760_vm10, %v2380_v30, 0.0 }
 0x398   : > { %831 = vadd.xlane.f32.xlu2 %v830_v31 }
 0x399   : > { %v781_v32 = vpop.xlane.xlu2 %780  ;;  %v763_v47 = vpop.xlane.xlu0 %762 }
 0x39a   : > { %v791_v33 = vsub.f32 %v758_v63, %v781_v32  ;;  %v785_v48 = vsub.f32 %v2656_v1, %v763_v47 }
 0x39c   : > { %v2672_v34 = vpop.eup %2381  ;;  %v805_v35 = vmul.f32 1.442695, %v791_v33  ;;  %v793_v50 = vmul.f32 1.442695, %v785_v48 }
 0x39d   : > { %v824_v37 = vsel %vm760_vm10, %v2672_v34, 0.0 }
 0x39e   : > { %825 = vadd.xlane.f32.xlu1 %v824_v37  ;;  %2383 = vpow2.f32 %v805_v35 }
 0x39f   : > { %2385 = vpow2.f32 %v799_v39 }
 0x3a1   : > { %v766_v44 = vpop.xlane.xlu2 %765 }
 0x3a2   : > { %v786_v45 = vsub.f32 %v753_v7, %v766_v44 }
 0x3a4   : > { %v2384_v40 = vpop.eup %2383  ;;  %v795_v46 = vmul.f32 1.442695, %v786_v45 }
 0x3a5   : > { %v827_v41 = vsel %vm760_vm10, %v2384_v40, 0.0  ;;  %v2386_v42 = vpop.eup %2385 }
 0x3a6   : > { %828 = vadd.xlane.f32.xlu0 %v827_v41  ;;  %v818_v43 = vsel %vm760_vm10, %v2386_v42, 0.0  ;;  %2387 = vpow2.f32 %v795_v46 }
 0x3a7   : > { %2389 = vpow2.f32 %v793_v50 }
 0x3ac   : > { %v2687_v49 = vpop.eup %2387 }
 0x3ae   : > { %819 = vadd.xlane.f32.xlu0 %v818_v43 }
 0x3b0   : > { %937 = vrot.lane.b32.xlu2 %v2624_v25, %s3019_s27  ;;  %v812_v25 = vsel %vm760_vm10, %v2687_v49, 0.0 }
 0x3b7   : > { %887 = vrot.lane.b32.xlu1 %v2616_v8, %s3019_s27  ;;  %v2390_v8 = vpop.eup %2389 }
 0x3b8   : > { %862 = vrot.lane.b32.xlu2 %v2613_v62, %s3019_s27  ;;  %v809_v62 = vsel %vm760_vm10, %v2390_v8, 0.0 }
 0x3c2   : > { %912 = vrot.lane.b32.xlu0 %v2620_v17, %s3019_s27 }
 0x3e1   : > { %813 = vadd.xlane.f32.xlu1 %v812_v25  ;;  %v2248_v25 = vld [vmem:[%s3004_s5 + $0x8] sm:$0xff] }
 0x3ec   : > { %810 = vadd.xlane.f32.xlu0 %v809_v62 }
 0x3f9   : > { %v823_v17 = vpop.xlane.xlu2 %822 }
 0x409   : > { %v817_v53 = vpop.xlane.xlu1 %816 }
 0x40b   : > { %v832_v51 = vpop.xlane.xlu2 %831 }
 0x40c   : > { %2391 = vrcp.f32 %v832_v51 }
 0x411   : > { %v826_v58 = vpop.xlane.xlu1 %825 }
 0x412   : > { %v2392_v55 = vpop.eup %2391 }
 0x413   : > { %v938_v52 = vpop.permute.xlu2 %937  ;;  %v848_v57 = vmul.f32 %v2392_v55, %v2380_v30 }
 0x414   : > { %950 = vmatpush.bf16.msrb.mxu0 %v938_v52 }
 0x415   : > { %v856_v60 = vpack.c.bf16 %v848_v57, %v848_v57 }
 0x417   : > { %v935_v5 = vunpack.c.l.b16 %v856_v60 }
 0x419   : > { %v829_v54 = vpop.xlane.xlu0 %828 }
 0x41a   : > { %2393 = vrcp.f32 %v829_v54 }
 0x41b   : > { %v863_v56 = vpop.permute.xlu2 %862  ;;  %2395 = vrcp.f32 %v817_v53 }
 0x41c   : > { %875 = vmatpush.bf16.msra.mxu1 %v863_v56  ;;  %2397 = vrcp.f32 %v826_v58 }
 0x420   : > { %v2394_v59 = vpop.eup %2393  ;;  %1014 = vmatpush.bf16.msrb.mxu1 %v2248_v25 }
 0x421   : > { %v847_v61 = vmul.f32 %v2394_v59, %v2384_v40  ;;  %v820_v63 = vpop.xlane.xlu0 %819  ;;  %v2396_v1 = vpop.eup %2395 }
 0x422   : > { %2399 = vrcp.f32 %v820_v63  ;;  %v843_v4 = vmul.f32 %v2396_v1, %v2667_v27  ;;  %v2398_v7 = vpop.eup %2397 }
 0x423   : > { %2401 = vrcp.f32 %v823_v17  ;;  %v855_v3 = vpack.c.bf16 %v847_v61, %v847_v61  ;;  %v846_v18 = vmul.f32 %v2398_v7, %v2672_v34 }
 0x424   : > { %v851_v15 = vpack.c.bf16 %v843_v4, %v843_v4 }
 0x425   : > { %v934_v6 = vunpack.c.l.b16 %v855_v3  ;;  %v854_v23 = vpack.c.bf16 %v846_v18, %v846_v18 }
 0x426   : > { %v884_v21 = vunpack.c.l.b16 %v851_v15 }
 0x427   : > { %v936_v9 = vpack.c.b16 %v935_v5, %v934_v6  ;;  %v910_v27 = vunpack.c.l.b16 %v854_v23  ;;  %v2354_v6 = vld [vmem:[%s3005_s6] ss:$0 sm:$0xff] }
 0x428   : > { %v2400_v11 = vpop.eup %2399 }
 0x429   : > { %v888_v12 = vpop.permute.xlu1 %887  ;;  %v2402_v13 = vpop.eup %2401  ;;  %v844_v16 = vmul.f32 %v2400_v11, %v2386_v42  ;;  %2089 = vmatmul.msk.bf16.vlgmr.msrb.gmra.mxu0 %vm760_vm10, %v936_v9 }
 0x42a   : > { %900 = vmatpush.bf16.msrb.mxu2 %v888_v12  ;;  %v845_v20 = vmul.f32 %v2402_v13, %v2663_v14 }
 0x42b   : > { %v852_v19 = vpack.c.bf16 %v844_v16, %v844_v16 }
 0x42c   : > { %v853_v26 = vpack.c.bf16 %v845_v20, %v845_v20 }
 0x42d   : > { %v885_v22 = vunpack.c.l.b16 %v852_v19 }
 0x42e   : > { %v909_v28 = vunpack.c.l.b16 %v853_v26 }
 0x42f   : > { %v886_v24 = vpack.c.b16 %v885_v22, %v884_v21 }
 0x430   : > { %v911_v30 = vpack.c.b16 %v910_v27, %v909_v28  ;;  %v2250_v28 = vld [vmem:[%s3008_s9 + $0x8] sm:$0xff] }
 0x431   : > { %2087 = vmatmul.msk.bf16.vlgmr.msrb.gmra.mxu2 %vm760_vm10, %v886_v24 }
 0x432   : > { %1116 = vmatpush.bf16.msra.mxu2 %v2250_v28 }
 0x434   : > { %v913_v29 = vpop.permute.xlu0 %912 }
 0x435   : > { %925 = vmatpush.bf16.msrb.mxu3 %v913_v29 }
 0x438   : > { %2088 = vmatmul.msk.bf16.vlgmr.msrb.gmra.mxu3 %vm760_vm10, %v911_v30 }
 0x454   : > { %v814_v31 = vpop.xlane.xlu1 %813 }
 0x455   : > { %2403 = vrcp.f32 %v814_v31  ;;  %v2249_v31 = vld [vmem:[%s3008_s9] sm:$0xff] }
 0x456   : > { %1117 = vmatpush.bf16.msra.mxu2 %v2249_v31  ;;  %v2358_v31 = vld [vmem:[%s3011_s12] ss:$0 sm:$0xff] }
 0x45b   : > { %v2404_v33 = vpop.eup %2403 }
 0x45c   : > { %v842_v14 = vmul.f32 %v2404_v33, %v2687_v49 }
 0x45e   : > { %v850_v35 = vpack.c.bf16 %v842_v14, %v842_v14 }
 0x45f   : > { %v811_v32 = vpop.xlane.xlu0 %810 }
 0x460   : > { %2405 = vrcp.f32 %v811_v32  ;;  %v860_v39 = vunpack.c.l.b16 %v850_v35 }
 0x466   : > { %v2406_v34 = vpop.eup %2405 }
 0x467   : > { %v841_v36 = vmul.f32 %v2406_v34, %v2390_v8  ;;  %v2247_v8 = vld [vmem:[%s3004_s5] sm:$0xff] }
 0x468   : > { %1015 = vmatpush.bf16.msrb.mxu1 %v2247_v8  ;;  %v2356_v8 = vld [vmem:[%s3007_s8] ss:$0 sm:$0xff] }
 0x469   : > { %v849_v37 = vpack.c.bf16 %v841_v36, %v841_v36 }
 0x46b   : > { %v859_v40 = vunpack.c.l.b16 %v849_v37 }
 0x46d   : > { %v861_v41 = vpack.c.b16 %v860_v39, %v859_v40 }
 0x46f   : > { %2086 = vmatmul.msk.bf16.vlgmr.msra.gmra.mxu1 %vm760_vm10, %v861_v41 }
 0x4a6   : > { %v952_v46 = vpop.f32.mrf.mxu0 }
 0x4ae   : > { %v954_v49 = vpop.f32.mrf.mxu0 }
 0x4af   : > { %v2316_v50 = vpack.i.bf16 %v954_v49, %v952_v46 }
 0x4b4   : > { %v902_v42 = vpop.f32.mrf.mxu2 }
 0x4bb   : > { %v927_v43 = vpop.f32.mrf.mxu3 }
 0x4bc   : > { %v904_v44 = vpop.f32.mrf.mxu2 }
 0x4bd   : > { %v2306_v45 = vpack.i.bf16 %v904_v44, %v902_v42 }
 0x4bf   : > { %2307 = vrot.lane.b32.xlu2 %v2306_v45, %s3017_s28 }
 0x4c3   : > { %v929_v47 = vpop.f32.mrf.mxu3 }
 0x4c4   : > { %v2311_v48 = vpack.i.bf16 %v929_v47, %v927_v43 }
 0x4c7   : > { %2312 = vrot.lane.b32.xlu2 %v2311_v48, %s3018_s29  ;;  %v2355_v48 = vld [vmem:[%s3006_s7] ss:$0 sm:$0xff] }
 0x4cf   : > { %2317 = vrot.lane.b32.xlu2 %v2316_v50, %s3016_s30 }
 0x4ec   : > { %v877_v17 = vpop.f32.mrf.mxu1 }
 0x4f4   : > { %v879_v56 = vpop.f32.mrf.mxu1 }
 0x519   : > { %v2308_v62 = vpop.permute.xlu2 %2307 }
 0x51a   : > { %v2310_v52 = vunpack.i.h.bf16 %v2308_v62  ;;  %v2309_v53 = vunpack.i.l.bf16 %v2308_v62 }
 0x51c   : > { %v982_v58 = vsel %vm642_vm8, %v879_v56, %v2310_v52  ;;  %v981_v59 = vsel %vm642_vm8, %v877_v17, %v2309_v53  ;;  %v2257_v56 = vld [vmem:[%s3010_s11 + $0x30] sm:$0xff] }
 0x521   : > { %v2313_v51 = vpop.permute.xlu2 %2312 }
 0x522   : > { %v2315_v54 = vunpack.i.h.bf16 %v2313_v51  ;;  %v2314_v55 = vunpack.i.l.bf16 %v2313_v51 }
 0x524   : > { %v983_v63 = vsel %vm760_vm10, %v981_v59, %v2314_v55  ;;  %v984_v1 = vsel %vm760_vm10, %v982_v58, %v2315_v54  ;;  %v2258_v55 = vld [vmem:[%s3010_s11 + $0x38] sm:$0xff]  ;;  %v2255_v58 = vld [vmem:[%s3010_s11 + $0x20] sm:$0xff] }
 0x525   : > { %1211 = vmatpush.bf16.msra.mxu3 %v2258_v55  ;;  %v2254_v59 = vld [vmem:[%s3010_s11 + $0x18] sm:$0xff] }
 0x529   : > { %v2318_v57 = vpop.permute.xlu2 %2317  ;;  %1212 = vmatpush.bf16.msra.mxu3 %v2257_v56 }
 0x52a   : > { %v2320_v60 = vunpack.i.h.bf16 %v2318_v57  ;;  %v2319_v61 = vunpack.i.l.bf16 %v2318_v57  ;;  %v2256_v57 = vld [vmem:[%s3010_s11 + $0x28] sm:$0xff] }
 0x52c   : > { %v986_v3 = vsel %vm985_vm11, %v983_v63, %v2319_v61  ;;  %v987_v4 = vsel %vm985_vm11, %v984_v1, %v2320_v60  ;;  %v2253_v60 = vld [vmem:[%s3010_s11 + $0x10] sm:$0xff]  ;;  %v2252_v61 = vld [vmem:[%s3010_s11 + $0x8] sm:$0xff]  ;;  %v2357_v63 = vld [vmem:[%s3009_s10] ss:$0 sm:$0xff] }
 0x52d   : > { %v992_v5 = vpack.c.bf16 %v987_v4, %v986_v3  ;;  %1213 = vmatpush.bf16.msra.mxu3 %v2256_v57  ;;  %v2251_v1 = vld [vmem:[%s3010_s11] sm:$0xff] }
 0x52f   : > { %2098 = vmatmul.msk.bf16.vlgmr.msrb.gmra.mxu1 %vm507_vm0, %v992_v5 }
 0x531   : > { %1214 = vmatpush.bf16.msra.mxu3 %v2255_v58 }
 0x535   : > { %1215 = vmatpush.bf16.msra.mxu3 %v2254_v59 }
 0x539   : > { %1216 = vmatpush.bf16.msra.mxu3 %v2253_v60 }
 0x53d   : > { %1217 = vmatpush.bf16.msra.mxu3 %v2252_v61 }
 0x541   : > { %1218 = vmatpush.bf16.msra.mxu3 %v2251_v1 }
 0x5ac   : > { %v1017_v7 = vpop.f32.mrf.mxu1 }
 0x5ad   : > { %v1022_v9 = vadd.f32 %v1017_v7, %v2577_v0 }
 0x5af   : > { %v2720_v11 = vadd.f32 %v2354_v6, %v1022_v9 }
 0x5b1   : > { %v1032_v12 = vsel %vm507_vm0, %v2720_v11, 0.0 }
 0x5b2   : > { %1033 = vadd.xlane.f32.xlu2 %v1032_v12 }
 0x5b4   : > { %v1019_v13 = vpop.f32.mrf.mxu1 }
 0x5b5   : > { %v1023_v15 = vadd.f32 %v1019_v13, %v2581_v2 }
 0x5b7   : > { %v2725_v16 = vadd.f32 %v2354_v6, %v1023_v15 }
 0x5b9   : > { %v1035_v18 = vsel %vm507_vm0, %v2725_v16, 0.0 }
 0x5ba   : > { %1036 = vadd.xlane.f32.xlu0 %v1035_v18 }
 0x625   : > { %v1034_v19 = vpop.xlane.xlu2 %1033 }
 0x626   : > { %v1038_v20 = vmul.f32 %v1034_v19, %v2585_v10 }
 0x628   : > { %v1040_v0 = vsub.f32 %v2720_v11, %v1038_v20 }
 0x62a   : > { %v1042_v21 = vmul.f32 %v1040_v0, %v1040_v0 }
 0x62c   : > { %v1044_v22 = vsel %vm507_vm0, %v1042_v21, 0.0 }
 0x62d   : > { %1045 = vadd.xlane.f32.xlu1 %v1044_v22  ;;  %v1037_v23 = vpop.xlane.xlu0 %1036 }
 0x62e   : > { %v1039_v24 = vmul.f32 %v1037_v23, %v2585_v10 }
 0x630   : > { %v1041_v2 = vsub.f32 %v2725_v16, %v1039_v24 }
 0x632   : > { %v1043_v26 = vmul.f32 %v1041_v2, %v1041_v2 }
 0x634   : > { %v1047_v27 = vsel %vm507_vm0, %v1043_v26, 0.0 }
 0x635   : > { %1048 = vadd.xlane.f32.xlu0 %v1047_v27 }
 0x6a0   : > { %v1046_v29 = vpop.xlane.xlu1 %1045 }
 0x6a1   : > { %v1050_v30 = vmul.f32 %v1046_v29, %v2585_v10 }
 0x6a3   : > { %v1052_v32 = vadd.f32 1e-06, %v1050_v30 }
 0x6a5   : > { %2407 = vrsqrt.f32 %v1052_v32  ;;  %vm1060_vm13 = vweird.f32 %v1052_v32 }
 0x6a8   : > { %v1049_v33 = vpop.xlane.xlu0 %1048 }
 0x6a9   : > { %v1051_v14 = vmul.f32 %v1049_v33, %v2585_v10 }
 0x6ab   : > { %v2408_v34 = vpop.eup %2407  ;;  %v1053_v35 = vadd.f32 1e-06, %v1051_v14 }
 0x6ac   : > { %v1055_v36 = vmul.f32 %v2408_v34, %v1052_v32  ;;  %vm1061_vm12 = vweird.f32 %v2408_v34 }
 0x6ad   : > { %2409 = vrsqrt.f32 %v1053_v35  ;;  %vm1062_vm14 = vmor %vm1060_vm13, %vm1061_vm12  ;;  %vm1070_vm1 = vweird.f32 %v1053_v35 }
 0x6ae   : > { %v1056_v37 = vmul.f32 %v2408_v34, %v1055_v36 }
 0x6b0   : > { %v1057_v39 = vmul.f32 0.5, %v1056_v37 }
 0x6b2   : > { %v1058_v40 = vsub.f32 1.5, %v1057_v39 }
 0x6b3   : > { %v2410_v41 = vpop.eup %2409 }
 0x6b4   : > { %v1059_v42 = vmul.f32 %v2408_v34, %v1058_v40  ;;  %v1065_v43 = vmul.f32 %v2410_v41, %v1053_v35  ;;  %vm1071_vm15 = vweird.f32 %v2410_v41 }
 0x6b5   : > { %vm1072_vm2 = vmor %vm1070_vm1, %vm1071_vm15 }
 0x6b6   : > { %v1066_v44 = vmul.f32 %v2410_v41, %v1065_v43  ;;  %v1063_v45 = vsel %vm1062_vm14, %v2408_v34, %v1059_v42 }
 0x6b7   : > { %v1074_v49 = vmul.f32 %v1063_v45, %v1040_v0 }
 0x6b8   : > { %v1067_v46 = vmul.f32 0.5, %v1066_v44 }
 0x6b9   : > { %v1079_v62 = vmul.f32 %v2355_v48, %v1074_v49 }
 0x6ba   : > { %v1068_v47 = vsub.f32 1.5, %v1067_v46 }
 0x6bb   : > { %v1084_v52 = vadd.f32 %v2356_v8, %v1079_v62 }
 0x6bc   : > { %v1069_v50 = vmul.f32 %v2410_v41, %v1068_v47 }
 0x6be   : > { %v1073_v25 = vsel %vm1072_vm2, %v2410_v41, %v1069_v50 }
 0x6bf   : > { %v1075_v17 = vmul.f32 %v1073_v25, %v1041_v2  ;;  %v2259_v25 = vld [vmem:[%s3002_s3 + $0x10] sm:$0xff] }
 0x6c1   : > { %v1080_v51 = vmul.f32 %v2355_v48, %v1075_v17  ;;  %v2260_v48 = vld [vmem:[%s3002_s3 + $0x18] sm:$0xff] }
 0x6c2   : > { %1317 = vmatpush.bf16.msra.mxu0 %v2260_v48 }
 0x6c3   : > { %v1085_v53 = vadd.f32 %v2356_v8, %v1080_v51 }
 0x6c5   : > { %v1090_v54 = vpack.c.bf16 %v1085_v53, %v1084_v52 }
 0x6c6   : > { %1318 = vmatpush.bf16.msra.mxu0 %v2259_v25 }
 0x6c7   : > { %2107 = vmatmul.msk.bf16.vlgmr.msra.gmra.mxu2 %vm507_vm0, %v1090_v54 }
 0x74a   : > { %v1119_v3 = vpop.f32.mrf.mxu2 }
 0x74b   : > { %v1120_v4 = vadd.f32 %v2357_v63, %v1119_v3  ;;  %v2359_v3 = vld [vmem:[%s3000_s1 + $0x1] ss:$0 sm:$0xff] }
 0x74d   : > { %v1124_v5 = vmul.f32 %v1120_v4, %v1120_v4 }
 0x74f   : > { %v1126_v6 = vmul.f32 %v1124_v5, %v1120_v4 }
 0x751   : > { %v1128_v7 = vmul.f32 0.044715, %v1126_v6 }
 0x752   : > { %v1121_v9 = vpop.f32.mrf.mxu2 }
 0x753   : > { %v1130_v12 = vadd.f32 %v1128_v7, %v1120_v4  ;;  %v1122_v13 = vadd.f32 %v2357_v63, %v1121_v9  ;;  %v2360_v7 = vld [vmem:[%s3001_s2 + $0x1] ss:$0 sm:$0xff] }
 0x755   : > { %v1132_v15 = vmul.f32 0.7978846, %v1130_v12  ;;  %v1125_v18 = vmul.f32 %v1122_v13, %v1122_v13 }
 0x757   : > { %v1127_v19 = vmul.f32 %v1125_v18, %v1122_v13  ;;  %2411 = vtanh.f32 %v1132_v15 }
 0x759   : > { %v1129_v20 = vmul.f32 0.044715, %v1127_v19 }
 0x75b   : > { %v1131_v0 = vadd.f32 %v1129_v20, %v1122_v13 }
 0x75d   : > { %v1133_v21 = vmul.f32 0.7978846, %v1131_v0  ;;  %v2412_v22 = vpop.eup %2411  ;;  %v2361_v0 = vld [vmem:[%s3003_s4 + $0x1] ss:$0 sm:$0xff] }
 0x75e   : > { %v1136_v23 = vadd.f32 1.0, %v2412_v22 }
 0x75f   : > { %2413 = vtanh.f32 %v1133_v21 }
 0x760   : > { %v1138_v2 = vmul.f32 0.5, %v1136_v23 }
 0x762   : > { %v1140_v28 = vmul.f32 %v1138_v2, %v1120_v4 }
 0x765   : > { %v2414_v24 = vpop.eup %2413 }
 0x766   : > { %v1137_v26 = vadd.f32 1.0, %v2414_v24 }
 0x768   : > { %v1139_v27 = vmul.f32 0.5, %v1137_v26 }
 0x76a   : > { %v1141_v29 = vmul.f32 %v1139_v27, %v1122_v13 }
 0x76c   : > { %v1158_v30 = vpack.c.bf16 %v1141_v29, %v1140_v28 }
 0x76e   : > { %1219 = vmatmul.bf16.vlgmr.msra.gmra.mxu3 %v1158_v30 }
 0x7f1   : > { %v1220_v32 = vpop.f32.mrf.mxu3 }
 0x7f2   : > { %v1221_v33 = vadd.f32 %v2358_v31, %v1220_v32 }
 0x7f4   : > { %v2781_v14 = vadd.f32 %v1221_v33, %v2720_v11 }
 0x7f6   : > { %v1231_v34 = vsel %vm507_vm0, %v2781_v14, 0.0 }
 0x7f7   : > { %1232 = vadd.xlane.f32.xlu1 %v1231_v34 }
 0x7f9   : > { %v1222_v35 = vpop.f32.mrf.mxu3 }
 0x7fa   : > { %v1223_v36 = vadd.f32 %v2358_v31, %v1222_v35 }
 0x7fc   : > { %v2786_v37 = vadd.f32 %v1223_v36, %v2725_v16 }
 0x7fe   : > { %v1234_v39 = vsel %vm507_vm0, %v2786_v37, 0.0 }
 0x7ff   : > { %1235 = vadd.xlane.f32.xlu0 %v1234_v39 }
 0x86a   : > { %v1233_v40 = vpop.xlane.xlu1 %1232 }
 0x86b   : > { %v1237_v41 = vmul.f32 %v1233_v40, %v2585_v10 }
 0x86d   : > { %v1239_v42 = vsub.f32 %v2781_v14, %v1237_v41 }
 0x86f   : > { %v1241_v11 = vmul.f32 %v1239_v42, %v1239_v42 }
 0x871   : > { %v1243_v43 = vsel %vm507_vm0, %v1241_v11, 0.0 }
 0x872   : > { %v1236_v44 = vpop.xlane.xlu0 %1235  ;;  %1244 = vadd.xlane.f32.xlu1 %v1243_v43 }
 0x873   : > { %v1238_v45 = vmul.f32 %v1236_v44, %v2585_v10 }
 0x875   : > { %v1240_v46 = vsub.f32 %v2786_v37, %v1238_v45 }
 0x877   : > { %v1242_v16 = vmul.f32 %v1240_v46, %v1240_v46 }
 0x879   : > { %v1246_v47 = vsel %vm507_vm0, %v1242_v16, 0.0 }
 0x87a   : > { %1247 = vadd.xlane.f32.xlu0 %v1246_v47 }
 0x8e5   : > { %v1245_v49 = vpop.xlane.xlu1 %1244 }
 0x8e6   : > { %v1249_v50 = vmul.f32 %v1245_v49, %v2585_v10 }
 0x8e8   : > { %v1251_v8 = vadd.f32 1e-06, %v1249_v50 }
 0x8ea   : > { %2415 = vrsqrt.f32 %v1251_v8  ;;  %vm1259_vm4 = vweird.f32 %v1251_v8 }
 0x8ed   : > { %v1248_v62 = vpop.xlane.xlu0 %1247 }
 0x8ee   : > { %v1250_v17 = vmul.f32 %v1248_v62, %v2585_v10 }
 0x8f0   : > { %v2416_v51 = vpop.eup %2415  ;;  %v1252_v52 = vadd.f32 1e-06, %v1250_v17 }
 0x8f1   : > { %v1254_v53 = vmul.f32 %v2416_v51, %v1251_v8  ;;  %vm1260_vm3 = vweird.f32 %v2416_v51 }
 0x8f2   : > { %2417 = vrsqrt.f32 %v1252_v52  ;;  %vm1261_vm5 = vmor %vm1259_vm4, %vm1260_vm3  ;;  %vm1269_vm7 = vweird.f32 %v1252_v52 }
 0x8f3   : > { %v1255_v54 = vmul.f32 %v2416_v51, %v1254_v53 }
 0x8f5   : > { %v1256_v55 = vmul.f32 0.5, %v1255_v54 }
 0x8f7   : > { %v1257_v56 = vsub.f32 1.5, %v1256_v55 }
 0x8f8   : > { %v2418_v57 = vpop.eup %2417 }
 0x8f9   : > { %v1258_v58 = vmul.f32 %v2416_v51, %v1257_v56  ;;  %v1264_v59 = vmul.f32 %v2418_v57, %v1252_v52  ;;  %vm1270_vm6 = vweird.f32 %v2418_v57 }
 0x8fa   : > { %vm1271_vm9 = vmor %vm1269_vm7, %vm1270_vm6 }
 0x8fb   : > { %v1265_v60 = vmul.f32 %v2418_v57, %v1264_v59  ;;  %v1262_v61 = vsel %vm1261_vm5, %v2416_v51, %v1258_v58 }
 0x8fc   : > { %v1273_v4 = vmul.f32 %v1262_v61, %v1239_v42 }
 0x8fd   : > { %v1266_v63 = vmul.f32 0.5, %v1265_v60 }
 0x8fe   : > { %v1278_v9 = vmul.f32 %v2359_v3, %v1273_v4 }
 0x8ff   : > { %v1267_v1 = vsub.f32 1.5, %v1266_v63 }
 0x900   : > { %v1283_v15 = vadd.f32 %v2360_v7, %v1278_v9 }
 0x901   : > { %v1268_v5 = vmul.f32 %v2418_v57, %v1267_v1 }
 0x903   : > { %v1272_v6 = vsel %vm1271_vm9, %v2418_v57, %v1268_v5 }
 0x904   : > { %v1274_v12 = vmul.f32 %v1272_v6, %v1240_v46 }
 0x906   : > { %v1279_v13 = vmul.f32 %v2359_v3, %v1274_v12 }
 0x908   : > { %v1284_v18 = vadd.f32 %v2360_v7, %v1279_v13 }
 0x90a   : > { %v1290_v19 = vpack.c.bf16 %v1284_v18, %v1283_v15 }
 0x90c   : > { %2155 = vmatmul.msk.bf16.vlgmr.msra.gmra.mxu0 %vm507_vm0, %v1290_v19 }
 0x989   : > { %v1320_v20 = vpop.f32.mrf.mxu0 }
 0x98a   : > { %v1321_v22 = vadd.f32 %v2361_v0, %v1320_v20 }
 0x98c   : > { %v1345_v26 = vpack.c.bf16 %v1321_v22, %v1321_v22 }
 0x98e   : > { %v1355_v28 = vunpack.c.l.b16 %v1345_v26 }
 0x991   : > { %v1322_v21 = vpop.f32.mrf.mxu0 }
 0x992   : > { %v1323_v23 = vadd.f32 %v2361_v0, %v1322_v21 }
 0x994   : > { %v2331_v24 = vpack.i.bf16 %v1323_v23, %v1321_v22  ;;  %v1346_v2 = vpack.c.bf16 %v1323_v23, %v1323_v23 }
 0x996   : > { %2332 = vrot.lane.b32.xlu2 %v2331_v24, %s2472_s23  ;;  %2327 = vrot.lane.b32.xlu0 %v2331_v24, %s2474_s25  ;;  %v1356_v27 = vunpack.c.l.b16 %v1346_v2  ;;  %s3024_s23 = smov 64   ;;  %s3026_s25 = smov 8  }
 0x997   : > { %2322 = vrot.lane.b32.xlu1 %v2331_v24, %s2473_s24  ;;  %s3025_s24 = smov 16  }
 0x998   : > { %v2817_v29 = vpack.c.b16 %v1356_v27, %v1355_v28 }
 0x99f   : > { %1358 = vrot.lane.b32.xlu1 %v2817_v29, %s3023_s21 }
 0x9f0   : > { %v2333_v31 = vpop.permute.xlu2 %2332 }
 0x9f1   : > { %v2335_v41 = vunpack.i.h.bf16 %v2333_v31  ;;  %v2334_v42 = vunpack.i.l.bf16 %v2333_v31 }
 0x9f3   : > { %v1352_v48 = vpack.c.bf16 %v2335_v41, %v2335_v41  ;;  %v1351_v49 = vpack.c.bf16 %v2334_v42, %v2334_v42 }
 0x9f5   : > { %v1437_v62 = vunpack.c.l.b16 %v1352_v48  ;;  %v1436_v17 = vunpack.c.l.b16 %v1351_v49 }
 0x9f7   : > { %v2830_v51 = vpack.c.b16 %v1437_v62, %v1436_v17 }
 0xa08   : > { %v2328_v30 = vpop.permute.xlu0 %2327 }
 0xa09   : > { %v2330_v32 = vunpack.i.h.bf16 %v2328_v30  ;;  %v2329_v33 = vunpack.i.l.bf16 %v2328_v30  ;;  %v2323_v34 = vpop.permute.xlu1 %2322 }
 0xa0a   : > { %v2325_v35 = vunpack.i.h.bf16 %v2323_v34  ;;  %v2324_v36 = vunpack.i.l.bf16 %v2323_v34 }
 0xa0b   : > { %v1350_v39 = vpack.c.bf16 %v2330_v32, %v2330_v32  ;;  %v1349_v40 = vpack.c.bf16 %v2329_v33, %v2329_v33 }
 0xa0c   : > { %v1348_v11 = vpack.c.bf16 %v2325_v35, %v2325_v35  ;;  %v1347_v43 = vpack.c.bf16 %v2324_v36, %v2324_v36 }
 0xa0d   : > { %v1410_v44 = vunpack.c.l.b16 %v1350_v39  ;;  %v1409_v45 = vunpack.c.l.b16 %v1349_v40 }
 0xa0e   : > { %v1383_v46 = vunpack.c.l.b16 %v1348_v11  ;;  %v1382_v16 = vunpack.c.l.b16 %v1347_v43 }
 0xa0f   : > { %v2821_v47 = vpack.c.b16 %v1410_v44, %v1409_v45 }
 0xa10   : > { %v2823_v50 = vpack.c.b16 %v1383_v46, %v1382_v16 }
 0xa11   : > { %v1359_v25 = vpop.permute.xlu1 %1358  ;;  %1412 = vrot.lane.b32.xlu1 %v2821_v47, %s3023_s21 }
 0xa12   : > { %v1364_v8 = vsel %vm642_vm8, %v1359_v25, 0  ;;  %1385 = vrot.lane.b32.xlu0 %v2823_v50, %s3023_s21 }
 0xa13   : > { %1373 = vmatpush.bf16.xpose.msra.mxu1 %v1364_v8 }
 0xa1a   : > { %1439 = vrot.lane.b32.xlu0 %v2830_v51, %s3023_s21  ;;  %2156 = vmatmul.msk.bf16.vlgmr.msra.gmra.mxu1 %vm642_vm8, %v2817_v29 }
 0xa83   : > { %v1413_v52 = vpop.permute.xlu1 %1412 }
 0xa84   : > { %v1386_v53 = vpop.permute.xlu0 %1385  ;;  %v1418_v54 = vsel %vm642_vm8, %v1413_v52, 0 }
 0xa85   : > { %v1391_v55 = vsel %vm642_vm8, %v1386_v53, 0  ;;  %1427 = vmatpush.bf16.xpose.msrb.mxu0 %v1418_v54 }
 0xa86   : > { %1400 = vmatpush.bf16.xpose.msrb.mxu2 %v1391_v55 }
 0xa8c   : > { %v1440_v56 = vpop.permute.xlu0 %1439  ;;  %2158 = vmatmul.msk.bf16.vlgmr.msrb.gmra.mxu0 %vm642_vm8, %v2821_v47 }
 0xa8d   : > { %v1445_v57 = vsel %vm642_vm8, %v1440_v56, 0  ;;  %2157 = vmatmul.msk.bf16.vlgmr.msrb.gmra.mxu2 %vm642_vm8, %v2823_v50 }
 0xa8e   : > { %1454 = vmatpush.bf16.xpose.msrb.mxu1 %v1445_v57 }
 0xa95   : > { %2159 = vmatmul.msk.bf16.vlgmr.msrb.gmra.mxu1 %vm642_vm8, %v2830_v51 }
 0xa97   : > { %v1375_v58 = vpop.f32.mrf.mxu1 }
 0xa98   : > { %v1461_v21 = vmul.f32 0.35355338, %v1375_v58 }
 0xa9a   : > { %v1469_v28 = vadd.f32 %v1461_v21, %v2642_v38 }
 0xa9c   : > { %v1477_v32 = vsel %vm760_vm10, %v1469_v28, -inf }
 0xa9f   : > { %v1377_v60 = vpop.f32.mrf.mxu1 }
 0xaa0   : > { %v1462_v30 = vmul.f32 0.35355338, %v1377_v60 }
 0xaa2   : > { %v1470_v33 = vadd.f32 %v1462_v30, %v2642_v38 }
 0xaa4   : > { %v1480_v34 = vsel %vm760_vm10, %v1470_v33, -inf }
 0xb09   : > { %v1429_v59 = vpop.f32.mrf.mxu0 }
 0xb0a   : > { %v1465_v61 = vmul.f32 0.35355338, %v1429_v59 }
 0xb0c   : > { %v1473_v63 = vadd.f32 %v1465_v61, %v2642_v38 }
 0xb0e   : > { %v1489_v1 = vsel %vm760_vm10, %v1473_v63, -inf }
 0xb0f   : > { %1490 = vmax.xlane.f32.xlu0 %v1489_v1 }
 0xb10   : > { %v1402_v3 = vpop.f32.mrf.mxu2 }
 0xb11   : > { %v1463_v4 = vmul.f32 0.35355338, %v1402_v3  ;;  %v1431_v5 = vpop.f32.mrf.mxu0 }
 0xb12   : > { %v1456_v6 = vpop.f32.mrf.mxu1  ;;  %v1466_v9 = vmul.f32 0.35355338, %v1431_v5 }
 0xb13   : > { %v1471_v7 = vadd.f32 %v1463_v4, %v2642_v38  ;;  %v1467_v22 = vmul.f32 0.35355338, %v1456_v6 }
 0xb14   : > { %v1474_v18 = vadd.f32 %v1466_v9, %v2642_v38 }
 0xb15   : > { %v1483_v12 = vsel %vm760_vm10, %v1471_v7, -inf  ;;  %v1475_v27 = vadd.f32 %v1467_v22, %v2642_v38 }
 0xb16   : > { %1484 = vmax.xlane.f32.xlu2 %v1483_v12  ;;  %v1492_v24 = vsel %vm760_vm10, %v1474_v18, -inf }
 0xb17   : > { %v1495_v31 = vsel %vm760_vm10, %v1475_v27, -inf }
 0xb18   : > { %v1404_v13 = vpop.f32.mrf.mxu2 }
 0xb19   : > { %v1464_v15 = vmul.f32 0.35355338, %v1404_v13 }
 0xb1a   : > { %v1458_v19 = vpop.f32.mrf.mxu1 }
 0xb1b   : > { %v1468_v20 = vmul.f32 0.35355338, %v1458_v19  ;;  %v1472_v0 = vadd.f32 %v1464_v15, %v2642_v38 }
 0xb1d   : > { %v1486_v23 = vsel %vm760_vm10, %v1472_v0, -inf  ;;  %v1476_v2 = vadd.f32 %v1468_v20, %v2642_v38 }
 0xb1e   : > { %1487 = vmax.xlane.f32.xlu1 %v1486_v23  ;;  %1493 = vmax.xlane.f32.xlu2 %v1492_v24 }
 0xb1f   : > { %v1498_v26 = vsel %vm760_vm10, %v1476_v2, -inf }
 0xb20   : > { %1499 = vmax.xlane.f32.xlu0 %v1498_v26 }
 0xb26   : > { %1496 = vmax.xlane.f32.xlu1 %v1495_v31  ;;  %1478 = vmax.xlane.f32.xlu2 %v1477_v32 }
 0xb2e   : > { %1481 = vmax.xlane.f32.xlu1 %v1480_v34 }
 0xb82   : > { %v1491_v35 = vpop.xlane.xlu0 %1490 }
 0xb83   : > { %v1505_v36 = vsub.f32 %v1473_v63, %v1491_v35 }
 0xb85   : > { %v1517_v39 = vmul.f32 1.442695, %v1505_v36 }
 0xb87   : > { %2419 = vpow2.f32 %v1517_v39 }
 0xb89   : > { %v1485_v40 = vpop.xlane.xlu2 %1484 }
 0xb8a   : > { %v1503_v41 = vsub.f32 %v1471_v7, %v1485_v40 }
 0xb8c   : > { %v1513_v42 = vmul.f32 1.442695, %v1503_v41 }
 0xb8d   : > { %v2861_v11 = vpop.eup %2419 }
 0xb8e   : > { %2421 = vpow2.f32 %v1513_v42  ;;  %v1537_v43 = vsel %vm760_vm10, %v2861_v11, 0.0 }
 0xb8f   : > { %1538 = vadd.xlane.f32.xlu1 %v1537_v43 }
 0xb91   : > { %v1494_v44 = vpop.xlane.xlu2 %1493  ;;  %v1488_v45 = vpop.xlane.xlu1 %1487 }
 0xb92   : > { %v1506_v38 = vsub.f32 %v1474_v18, %v1494_v44  ;;  %v1504_v54 = vsub.f32 %v1472_v0, %v1488_v45 }
 0xb93   : > { %v1500_v46 = vpop.xlane.xlu0 %1499 }
 0xb94   : > { %v2865_v16 = vpop.eup %2421  ;;  %v1519_v48 = vmul.f32 1.442695, %v1506_v38  ;;  %v1508_v49 = vsub.f32 %v1476_v2, %v1500_v46  ;;  %v1515_v58 = vmul.f32 1.442695, %v1504_v54 }
 0xb95   : > { %v1531_v25 = vsel %vm760_vm10, %v2865_v16, 0.0 }
 0xb96   : > { %2423 = vpow2.f32 %v1519_v48  ;;  %v1523_v8 = vmul.f32 1.442695, %v1508_v49  ;;  %1532 = vadd.xlane.f32.xlu0 %v1531_v25 }
 0xb98   : > { %2425 = vpow2.f32 %v1523_v8 }
 0xb99   : > { %v1497_v62 = vpop.xlane.xlu1 %1496  ;;  %v1479_v1 = vpop.xlane.xlu2 %1478 }
 0xb9a   : > { %v1507_v17 = vsub.f32 %v1475_v27, %v1497_v62  ;;  %v1501_v3 = vsub.f32 %v1469_v28, %v1479_v1 }
 0xb9c   : > { %v2424_v52 = vpop.eup %2423  ;;  %v1521_v53 = vmul.f32 1.442695, %v1507_v17  ;;  %v1509_v4 = vmul.f32 1.442695, %v1501_v3 }
 0xb9d   : > { %v1540_v55 = vsel %vm760_vm10, %v2424_v52, 0.0 }
 0xb9e   : > { %v2426_v56 = vpop.eup %2425  ;;  %1541 = vadd.xlane.f32.xlu0 %v1540_v55  ;;  %2427 = vpow2.f32 %v1521_v53 }
 0xb9f   : > { %v1546_v57 = vsel %vm760_vm10, %v2426_v56, 0.0  ;;  %2429 = vpow2.f32 %v1515_v58 }
 0xba0   : > { %1547 = vadd.xlane.f32.xlu1 %v1546_v57  ;;  %2431 = vpow2.f32 %v1509_v4 }
 0xba1   : > { %v1482_v6 = vpop.xlane.xlu1 %1481 }
 0xba4   : > { %v2428_v59 = vpop.eup %2427 }
 0xba5   : > { %v1543_v60 = vsel %vm760_vm10, %v2428_v59, 0.0  ;;  %v2430_v61 = vpop.eup %2429 }
 0xba6   : > { %1544 = vadd.xlane.f32.xlu2 %v1543_v60  ;;  %v1534_v63 = vsel %vm760_vm10, %v2430_v61, 0.0  ;;  %v2881_v5 = vpop.eup %2431 }
 0xba7   : > { %v1525_v7 = vsel %vm760_vm10, %v2881_v5, 0.0 }
 0xbae   : > { %1535 = vadd.xlane.f32.xlu2 %v1534_v63 }
 0xbb2   : > { %1603 = vrot.lane.b32.xlu0 %v2823_v50, %s3024_s23  ;;  %v1502_v50 = vsub.f32 %v1470_v33, %v1482_v6 }
 0xbb4   : > { %v1511_v9 = vmul.f32 1.442695, %v1502_v50  ;;  %v2262_v50 = vld [vmem:[%s3004_s5 + $0x18] sm:$0xff] }
 0xbb6   : > { %2433 = vpow2.f32 %v1511_v9  ;;  %v2261_v9 = vld [vmem:[%s3004_s5 + $0x10] sm:$0xff] }
 0xbb9   : > { %1653 = vrot.lane.b32.xlu1 %v2830_v51, %s3024_s23 }
 0xbbc   : > { %v2434_v51 = vpop.eup %2433 }
 0xbc1   : > { %1578 = vrot.lane.b32.xlu1 %v2817_v29, %s3024_s23  ;;  %v1528_v29 = vsel %vm760_vm10, %v2434_v51, 0.0 }
 0xbc6   : > { %1628 = vrot.lane.b32.xlu2 %v2821_v47, %s3024_s23 }
 0xbdc   : > { %1526 = vadd.xlane.f32.xlu0 %v1525_v7 }
 0xbef   : > { %1529 = vadd.xlane.f32.xlu2 %v1528_v29 }
 0xc02   : > { %v1539_v13 = vpop.xlane.xlu1 %1538 }
 0xc09   : > { %v1533_v12 = vpop.xlane.xlu0 %1532 }
 0xc11   : > { %v1542_v47 = vpop.xlane.xlu0 %1541 }
 0xc12   : > { %2435 = vrcp.f32 %v1542_v47 }
 0xc13   : > { %v1548_v15 = vpop.xlane.xlu1 %1547  ;;  %2437 = vrcp.f32 %v1539_v13 }
 0xc14   : > { %2439 = vrcp.f32 %v1548_v15 }
 0xc18   : > { %v2436_v19 = vpop.eup %2435 }
 0xc19   : > { %v1545_v18 = vpop.xlane.xlu2 %1544  ;;  %v2438_v20 = vpop.eup %2437  ;;  %v1562_v21 = vmul.f32 %v2436_v19, %v2424_v52 }
 0xc1a   : > { %2441 = vrcp.f32 %v1545_v18  ;;  %v2440_v0 = vpop.eup %2439  ;;  %v1561_v23 = vmul.f32 %v2438_v20, %v2861_v11 }
 0xc1b   : > { %2443 = vrcp.f32 %v1533_v12  ;;  %v1564_v27 = vmul.f32 %v2440_v0, %v2426_v56  ;;  %v1570_v28 = vpack.c.bf16 %v1562_v21, %v1562_v21 }
 0xc1c   : > { %v1569_v32 = vpack.c.bf16 %v1561_v23, %v1561_v23 }
 0xc1d   : > { %v1572_v34 = vpack.c.bf16 %v1564_v27, %v1564_v27  ;;  %v1626_v35 = vunpack.c.l.b16 %v1570_v28 }
 0xc1e   : > { %v1625_v40 = vunpack.c.l.b16 %v1569_v32 }
 0xc1f   : > { %v1651_v43 = vunpack.c.l.b16 %v1572_v34 }
 0xc20   : > { %v2442_v22 = vpop.eup %2441  ;;  %v1627_v45 = vpack.c.b16 %v1626_v35, %v1625_v40 }
 0xc21   : > { %v1563_v24 = vmul.f32 %v2442_v22, %v2428_v59  ;;  %v1536_v2 = vpop.xlane.xlu2 %1535  ;;  %v2444_v26 = vpop.eup %2443 }
 0xc22   : > { %2445 = vrcp.f32 %v1536_v2  ;;  %v1559_v33 = vmul.f32 %v2444_v26, %v2865_v16 }
 0xc23   : > { %v1571_v31 = vpack.c.bf16 %v1563_v24, %v1563_v24 }
 0xc24   : > { %v1604_v30 = vpop.permute.xlu0 %1603  ;;  %v1567_v41 = vpack.c.bf16 %v1559_v33, %v1559_v33 }
 0xc25   : > { %1616 = vmatpush.bf16.msrb.mxu3 %v1604_v30  ;;  %v1650_v39 = vunpack.c.l.b16 %v1571_v31  ;;  %v2362_v30 = vld [vmem:[%s3005_s6 + $0x1] ss:$0 sm:$0xff] }
 0xc26   : > { %v1600_v48 = vunpack.c.l.b16 %v1567_v41 }
 0xc27   : > { %v1652_v46 = vpack.c.b16 %v1651_v43, %v1650_v39 }
 0xc28   : > { %v2446_v36 = vpop.eup %2445 }
 0xc29   : > { %v1560_v42 = vmul.f32 %v2446_v36, %v2430_v61  ;;  %v1629_v11 = vpop.permute.xlu2 %1628 }
 0xc2a   : > { %1641 = vmatpush.bf16.msra.mxu0 %v1629_v11 }
 0xc2b   : > { %v1654_v44 = vpop.permute.xlu1 %1653  ;;  %v1568_v38 = vpack.c.bf16 %v1560_v42, %v1560_v42 }
 0xc2c   : > { %1666 = vmatpush.bf16.msra.mxu1 %v1654_v44 }
 0xc2d   : > { %v1601_v49 = vunpack.c.l.b16 %v1568_v38  ;;  %2162 = vmatmul.msk.bf16.vlgmr.msra.gmra.mxu0 %vm760_vm10, %v1627_v45 }
 0xc2f   : > { %2163 = vmatmul.msk.bf16.vlgmr.msra.gmra.mxu1 %vm760_vm10, %v1652_v46  ;;  %v1602_v16 = vpack.c.b16 %v1601_v49, %v1600_v48  ;;  %v2264_v48 = vld [vmem:[%s3008_s9 + $0x18] sm:$0xff] }
 0xc30   : > { %1837 = vmatpush.bf16.msra.mxu3 %v2264_v48 }
 0xc31   : > { %2161 = vmatmul.msk.bf16.vlgmr.msrb.gmra.mxu3 %vm760_vm10, %v1602_v16 }
 0xc33   : > { %v1579_v25 = vpop.permute.xlu1 %1578 }
 0xc34   : > { %1591 = vmatpush.bf16.msra.mxu2 %v1579_v25  ;;  %v2263_v25 = vld [vmem:[%s3008_s9 + $0x10] sm:$0xff] }
 0xc35   : > { %1838 = vmatpush.bf16.msra.mxu3 %v2263_v25 }
 0xc38   : > { %1730 = vmatpush.bf16.msrb.mxu2 %v2262_v50  ;;  %v2364_v50 = vld [vmem:[%s3007_s8 + $0x1] ss:$0 sm:$0xff] }
 0xc3c   : > { %1731 = vmatpush.bf16.msrb.mxu2 %v2261_v9 }
 0xc4f   : > { %v1527_v8 = vpop.xlane.xlu0 %1526 }
 0xc50   : > { %2447 = vrcp.f32 %v1527_v8 }
 0xc56   : > { %v2448_v17 = vpop.eup %2447 }
 0xc57   : > { %v1557_v52 = vmul.f32 %v2448_v17, %v2881_v5 }
 0xc59   : > { %v1565_v54 = vpack.c.bf16 %v1557_v52, %v1557_v52 }
 0xc5b   : > { %v1575_v57 = vunpack.c.l.b16 %v1565_v54 }
 0xc62   : > { %v1530_v62 = vpop.xlane.xlu2 %1529 }
 0xc63   : > { %2449 = vrcp.f32 %v1530_v62 }
 0xc69   : > { %v2450_v53 = vpop.eup %2449 }
 0xc6a   : > { %v1558_v55 = vmul.f32 %v2450_v53, %v2434_v51 }
 0xc6c   : > { %v1566_v56 = vpack.c.bf16 %v1558_v55, %v1558_v55 }
 0xc6e   : > { %v1576_v58 = vunpack.c.l.b16 %v1566_v56 }
 0xc70   : > { %v1577_v59 = vpack.c.b16 %v1576_v58, %v1575_v57 }
 0xc72   : > { %2160 = vmatmul.msk.bf16.vlgmr.msra.gmra.mxu2 %vm760_vm10, %v1577_v59 }
 0xcaa   : > { %v1643_v60 = vpop.f32.mrf.mxu0 }
 0xcac   : > { %v1668_v3 = vpop.f32.mrf.mxu1 }
 0xcb2   : > { %v1645_v61 = vpop.f32.mrf.mxu0 }
 0xcb3   : > { %v2336_v63 = vpack.i.bf16 %v1645_v61, %v1643_v60 }
 0xcb4   : > { %v1618_v1 = vpop.f32.mrf.mxu3  ;;  %v1670_v5 = vpop.f32.mrf.mxu1 }
 0xcb5   : > { %2337 = vrot.lane.b32.xlu1 %v2336_v63, %s3025_s24  ;;  %v2346_v7 = vpack.i.bf16 %v1670_v5, %v1668_v3 }
 0xcbc   : > { %v1620_v4 = vpop.f32.mrf.mxu3 }
 0xcbd   : > { %v2341_v6 = vpack.i.bf16 %v1620_v4, %v1618_v1  ;;  %v2363_v4 = vld [vmem:[%s3006_s7 + $0x1] ss:$0 sm:$0xff] }
 0xcbf   : > { %2342 = vrot.lane.b32.xlu1 %v2341_v6, %s3026_s25 }
 0xcc7   : > { %2347 = vrot.lane.b32.xlu1 %v2346_v7, %s3027_s19  ;;  %s3028_s19 = sshll.u32 %s3030_s20, 3 }
 0xcc8   : > { %s496_s16 = scalar_lea.vmem %s3014_s15, %s3028_s19 }
 0xcf5   : > { %v1593_v29 = vpop.f32.mrf.mxu2 }
 0xcfd   : > { %v1595_v15 = vpop.f32.mrf.mxu2 }
 0xd27   : > { %v2338_v51 = vpop.permute.xlu1 %2337 }
 0xd28   : > { %v2340_v20 = vunpack.i.h.bf16 %v2338_v51  ;;  %v2339_v0 = vunpack.i.l.bf16 %v2338_v51 }
 0xd31   : > { %v2343_v12 = vpop.permute.xlu1 %2342 }
 0xd32   : > { %v2345_v13 = vunpack.i.h.bf16 %v2343_v12  ;;  %v2344_v47 = vunpack.i.l.bf16 %v2343_v12 }
 0xd34   : > { %v1698_v18 = vsel %vm642_vm8, %v1595_v15, %v2345_v13  ;;  %v1697_v19 = vsel %vm642_vm8, %v1593_v29, %v2344_v47  ;;  %v2272_v15 = vld [vmem:[%s3010_s11 + $0x78] sm:$0xff] }
 0xd35   : > { %v1699_v24 = vsel %vm760_vm10, %v1697_v19, %v2339_v0  ;;  %v1700_v2 = vsel %vm760_vm10, %v1698_v18, %v2340_v20  ;;  %1934 = vmatpush.bf16.msrb.mxu0 %v2272_v15  ;;  %v2271_v18 = vld [vmem:[%s3010_s11 + $0x70] sm:$0xff]  ;;  %v2270_v19 = vld [vmem:[%s3010_s11 + $0x68] sm:$0xff]  ;;  %v2269_v20 = vld [vmem:[%s3010_s11 + $0x60] sm:$0xff] }
 0xd36   : > { %v2268_v0 = vld [vmem:[%s3010_s11 + $0x58] sm:$0xff] }
 0xd39   : > { %v2348_v21 = vpop.permute.xlu1 %2347  ;;  %1935 = vmatpush.bf16.msrb.mxu0 %v2271_v18 }
 0xd3a   : > { %v2350_v22 = vunpack.i.h.bf16 %v2348_v21  ;;  %v2349_v23 = vunpack.i.l.bf16 %v2348_v21  ;;  %v2267_v21 = vld [vmem:[%s3010_s11 + $0x50] sm:$0xff] }
 0xd3c   : > { %v1701_v26 = vsel %vm985_vm11, %v1699_v24, %v2349_v23  ;;  %v1702_v27 = vsel %vm985_vm11, %v1700_v2, %v2350_v22  ;;  %v2266_v22 = vld [vmem:[%s3010_s11 + $0x48] sm:$0xff]  ;;  %v2365_v23 = vld [vmem:[%s3009_s10 + $0x1] ss:$0 sm:$0xff] }
 0xd3d   : > { %v1708_v28 = vpack.c.bf16 %v1702_v27, %v1701_v26  ;;  %1936 = vmatpush.bf16.msrb.mxu0 %v2270_v19  ;;  %v2265_v24 = vld [vmem:[%s3010_s11 + $0x40] sm:$0xff] }
 0xd3e   : > { %v2367_v19 = vld [vmem:[%s3012_s13] ss:$0 sm:$0xff] }
 0xd3f   : > { %2176 = vmatmul.msk.bf16.vlgmr.msrb.gmra.mxu2 %vm507_vm0, %v1708_v28 }
 0xd41   : > { %1937 = vmatpush.bf16.msrb.mxu0 %v2269_v20 }
 0xd45   : > { %1938 = vmatpush.bf16.msrb.mxu0 %v2268_v0  ;;  %v2368_v0 = vld [vmem:[%s3013_s14] ss:$0 sm:$0xff] }
 0xd49   : > { %1939 = vmatpush.bf16.msrb.mxu0 %v2267_v21 }
 0xd4d   : > { %1940 = vmatpush.bf16.msrb.mxu0 %v2266_v22 }
 0xd51   : > { %1941 = vmatpush.bf16.msrb.mxu0 %v2265_v24 }
 0xdc2   : > { %v1733_v31 = vpop.f32.mrf.mxu2 }
 0xdc3   : > { %v1738_v32 = vadd.f32 %v1733_v31, %v2781_v14 }
 0xdc5   : > { %v2913_v33 = vadd.f32 %v2362_v30, %v1738_v32 }
 0xdc7   : > { %v1751_v34 = vsel %vm507_vm0, %v2913_v33, 0.0 }
 0xdc8   : > { %1752 = vadd.xlane.f32.xlu0 %v1751_v34 }
 0xdca   : > { %v1735_v35 = vpop.f32.mrf.mxu2 }
 0xdcb   : > { %v1739_v36 = vadd.f32 %v1735_v35, %v2786_v37 }
 0xdcd   : > { %v2918_v39 = vadd.f32 %v2362_v30, %v1739_v36 }
 0xdcf   : > { %v1754_v40 = vsel %vm507_vm0, %v2918_v39, 0.0 }
 0xdd0   : > { %1755 = vadd.xlane.f32.xlu1 %v1754_v40 }
 0xe3b   : > { %v1753_v41 = vpop.xlane.xlu0 %1752 }
 0xe3c   : > { %v1757_v42 = vmul.f32 %v1753_v41, %v2585_v10 }
 0xe3e   : > { %v1759_v14 = vsub.f32 %v2913_v33, %v1757_v42 }
 0xe40   : > { %v1761_v11 = vmul.f32 %v1759_v14, %v1759_v14 }
 0xe42   : > { %v1763_v43 = vsel %vm507_vm0, %v1761_v11, 0.0 }
 0xe43   : > { %1764 = vadd.xlane.f32.xlu2 %v1763_v43  ;;  %v1756_v44 = vpop.xlane.xlu1 %1755 }
 0xe44   : > { %v1758_v45 = vmul.f32 %v1756_v44, %v2585_v10 }
 0xe46   : > { %v1760_v37 = vsub.f32 %v2918_v39, %v1758_v45 }
 0xe48   : > { %v1762_v38 = vmul.f32 %v1760_v37, %v1760_v37 }
 0xe4a   : > { %v1766_v46 = vsel %vm507_vm0, %v1762_v38, 0.0 }
 0xe4b   : > { %1767 = vadd.xlane.f32.xlu0 %v1766_v46 }
 0xeb6   : > { %v1765_v49 = vpop.xlane.xlu2 %1764 }
 0xeb7   : > { %v1769_v16 = vmul.f32 %v1765_v49, %v2585_v10 }
 0xeb9   : > { %v1771_v8 = vadd.f32 1e-06, %v1769_v16  ;;  %v2366_v16 = vld [vmem:[%s3011_s12 + $0x1] ss:$0 sm:$0xff] }
 0xebb   : > { %2451 = vrsqrt.f32 %v1771_v8  ;;  %vm1779_vm10 = vweird.f32 %v1771_v8 }
 0xebe   : > { %v1768_v62 = vpop.xlane.xlu0 %1767 }
 0xebf   : > { %v1770_v17 = vmul.f32 %v1768_v62, %v2585_v10 }
 0xec1   : > { %v2452_v52 = vpop.eup %2451  ;;  %v1772_v53 = vadd.f32 1e-06, %v1770_v17 }
 0xec2   : > { %v1774_v54 = vmul.f32 %v2452_v52, %v1771_v8  ;;  %vm1780_vm8 = vweird.f32 %v2452_v52 }
 0xec3   : > { %2453 = vrsqrt.f32 %v1772_v53  ;;  %vm1781_vm11 = vmor %vm1779_vm10, %vm1780_vm8  ;;  %vm1789_vm13 = vweird.f32 %v1772_v53 }
 0xec4   : > { %v1775_v55 = vmul.f32 %v2452_v52, %v1774_v54 }
 0xec6   : > { %v1776_v56 = vmul.f32 0.5, %v1775_v55 }
 0xec8   : > { %v1777_v57 = vsub.f32 1.5, %v1776_v56 }
 0xec9   : > { %v2454_v58 = vpop.eup %2453 }
 0xeca   : > { %v1778_v59 = vmul.f32 %v2452_v52, %v1777_v57  ;;  %v1784_v60 = vmul.f32 %v2454_v58, %v1772_v53  ;;  %vm1790_vm12 = vweird.f32 %v2454_v58 }
 0xecb   : > { %vm1791_vm14 = vmor %vm1789_vm13, %vm1790_vm12 }
 0xecc   : > { %v1785_v61 = vmul.f32 %v2454_v58, %v1784_v60  ;;  %v1782_v63 = vsel %vm1781_vm11, %v2452_v52, %v1778_v59 }
 0xecd   : > { %v1793_v6 = vmul.f32 %v1782_v63, %v1759_v14 }
 0xece   : > { %v1786_v1 = vmul.f32 0.5, %v1785_v61 }
 0xecf   : > { %v1798_v9 = vmul.f32 %v2363_v4, %v1793_v6 }
 0xed0   : > { %v1787_v3 = vsub.f32 1.5, %v1786_v1 }
 0xed1   : > { %v1803_v12 = vadd.f32 %v2364_v50, %v1798_v9 }
 0xed2   : > { %v1788_v5 = vmul.f32 %v2454_v58, %v1787_v3 }
 0xed4   : > { %v1792_v7 = vsel %vm1791_vm14, %v2454_v58, %v1788_v5 }
 0xed5   : > { %v1794_v51 = vmul.f32 %v1792_v7, %v1760_v37 }
 0xed7   : > { %v1799_v29 = vmul.f32 %v2363_v4, %v1794_v51 }
 0xed9   : > { %v1804_v13 = vadd.f32 %v2364_v50, %v1799_v29 }
 0xedb   : > { %v1810_v47 = vpack.c.bf16 %v1804_v13, %v1803_v12 }
 0xedd   : > { %2193 = vmatmul.msk.bf16.vlgmr.msra.gmra.mxu3 %vm507_vm0, %v1810_v47 }
 0xf60   : > { %v1840_v2 = vpop.f32.mrf.mxu3 }
 0xf61   : > { %v1841_v26 = vadd.f32 %v2365_v23, %v1840_v2 }
 0xf63   : > { %v1845_v27 = vmul.f32 %v1841_v26, %v1841_v26 }
 0xf65   : > { %v1847_v28 = vmul.f32 %v1845_v27, %v1841_v26 }
 0xf67   : > { %v1849_v30 = vmul.f32 0.044715, %v1847_v28 }
 0xf68   : > { %v1842_v31 = vpop.f32.mrf.mxu3 }
 0xf69   : > { %v1851_v32 = vadd.f32 %v1849_v30, %v1841_v26  ;;  %v1843_v34 = vadd.f32 %v2365_v23, %v1842_v31 }
 0xf6b   : > { %v1853_v35 = vmul.f32 0.7978846, %v1851_v32  ;;  %v1846_v36 = vmul.f32 %v1843_v34, %v1843_v34 }
 0xf6d   : > { %v1848_v40 = vmul.f32 %v1846_v36, %v1843_v34  ;;  %2455 = vtanh.f32 %v1853_v35 }
 0xf6f   : > { %v1850_v41 = vmul.f32 0.044715, %v1848_v40 }
 0xf71   : > { %v1852_v42 = vadd.f32 %v1850_v41, %v1843_v34 }
 0xf73   : > { %v1854_v14 = vmul.f32 0.7978846, %v1852_v42  ;;  %v2456_v11 = vpop.eup %2455 }
 0xf74   : > { %v1857_v43 = vadd.f32 1.0, %v2456_v11 }
 0xf75   : > { %2457 = vtanh.f32 %v1854_v14 }
 0xf76   : > { %v1859_v45 = vmul.f32 0.5, %v1857_v43 }
 0xf78   : > { %v1861_v46 = vmul.f32 %v1859_v45, %v1841_v26 }
 0xf7b   : > { %v2458_v44 = vpop.eup %2457 }
 0xf7c   : > { %v1858_v37 = vadd.f32 1.0, %v2458_v44 }
 0xf7e   : > { %v1860_v38 = vmul.f32 0.5, %v1858_v37 }
 0xf80   : > { %v1862_v48 = vmul.f32 %v1860_v38, %v1843_v34 }
 0xf82   : > { %v1880_v49 = vpack.c.bf16 %v1862_v48, %v1861_v46 }
 0xf84   : > { %1942 = vmatmul.bf16.vlgmr.msrb.gmra.mxu0 %v1880_v49 }
0x1001   : > { %v1943_v25 = vpop.f32.mrf.mxu0 }
0x1002   : > { %v1944_v8 = vadd.f32 %v2366_v16, %v1943_v25 }
0x1004   : > { %v1948_v62 = vadd.f32 %v1944_v8, %v2913_v33 }
0x1006   : > { %v1952_v17 = vsel %vm507_vm0, %v1948_v62, 0.0 }
0x1007   : > { %1953 = vadd.xlane.f32.xlu2 %v1952_v17 }
0x1009   : > { %v1945_v52 = vpop.f32.mrf.mxu0 }
0x100a   : > { %v1946_v53 = vadd.f32 %v2366_v16, %v1945_v52 }
0x100c   : > { %v1949_v54 = vadd.f32 %v1946_v53, %v2918_v39 }
0x100e   : > { %v1955_v55 = vsel %vm507_vm0, %v1949_v54, 0.0 }
0x100f   : > { %1956 = vadd.xlane.f32.xlu0 %v1955_v55 }
0x107a   : > { %v1954_v56 = vpop.xlane.xlu2 %1953 }
0x107b   : > { %v1958_v57 = vmul.f32 %v1954_v56, %v2585_v10 }
0x107d   : > { %v1960_v58 = vsub.f32 %v1948_v62, %v1958_v57 }
0x107f   : > { %v1962_v59 = vmul.f32 %v1960_v58, %v1960_v58 }
0x1081   : > { %v1964_v60 = vsel %vm507_vm0, %v1962_v59, 0.0 }
0x1082   : > { %v1957_v61 = vpop.xlane.xlu0 %1956  ;;  %1965 = vadd.xlane.f32.xlu2 %v1964_v60 }
0x1083   : > { %v1959_v33 = vmul.f32 %v1957_v61, %v2585_v10 }
0x1085   : > { %v1961_v63 = vsub.f32 %v1949_v54, %v1959_v33 }
0x1087   : > { %v1963_v1 = vmul.f32 %v1961_v63, %v1961_v63 }
0x1089   : > { %v1967_v3 = vsel %vm507_vm0, %v1963_v1, 0.0 }
0x108a   : > { %1968 = vadd.xlane.f32.xlu0 %v1967_v3 }
0x10f5   : > { %v1966_v39 = vpop.xlane.xlu2 %1965 }
0x10f6   : > { %v1970_v4 = vmul.f32 %v1966_v39, %v2585_v10 }
0x10f8   : > { %v1972_v6 = vadd.f32 1e-06, %v1970_v4 }
0x10fa   : > { %2459 = vrsqrt.f32 %v1972_v6  ;;  %vm1980_vm1 = vweird.f32 %v1972_v6 }
0x10fd   : > { %v1969_v5 = vpop.xlane.xlu0 %1968 }
0x10fe   : > { %v1971_v7 = vmul.f32 %v1969_v5, %v2585_v10 }
0x1100   : > { %v2460_v50 = vpop.eup %2459  ;;  %v1973_v9 = vadd.f32 1e-06, %v1971_v7 }
0x1101   : > { %v1975_v51 = vmul.f32 %v2460_v50, %v1972_v6  ;;  %vm1981_vm15 = vweird.f32 %v2460_v50 }
0x1102   : > { %2461 = vrsqrt.f32 %v1973_v9  ;;  %vm1982_vm2 = vmor %vm1980_vm1, %vm1981_vm15  ;;  %vm1990_vm4 = vweird.f32 %v1973_v9 }
0x1103   : > { %v1976_v29 = vmul.f32 %v2460_v50, %v1975_v51 }
0x1105   : > { %v1977_v12 = vmul.f32 0.5, %v1976_v29 }
0x1107   : > { %v1978_v13 = vsub.f32 1.5, %v1977_v12 }
0x1108   : > { %v2462_v47 = vpop.eup %2461 }
0x1109   : > { %v1979_v15 = vmul.f32 %v2460_v50, %v1978_v13  ;;  %v1985_v18 = vmul.f32 %v2462_v47, %v1973_v9  ;;  %vm1991_vm3 = vweird.f32 %v2462_v47 }
0x110a   : > { %vm1992_vm5 = vmor %vm1990_vm4, %vm1991_vm3 }
0x110b   : > { %v1983_v20 = vsel %vm1982_vm2, %v2460_v50, %v1979_v15  ;;  %v1986_v10 = vmul.f32 %v2462_v47, %v1985_v18 }
0x110c   : > { %v1994_v21 = vmul.f32 %v1983_v20, %v1960_v58 }
0x110d   : > { %v1987_v22 = vmul.f32 0.5, %v1986_v10 }
0x110e   : > { %v1999_v23 = vmul.f32 %v2367_v19, %v1994_v21 }
0x110f   : > { %v1988_v24 = vsub.f32 1.5, %v1987_v22 }
0x1110   : > { %v2004_v2 = vadd.f32 %v2368_v0, %v1999_v23 }
0x1111   : > { %v1989_v26 = vmul.f32 %v2462_v47, %v1988_v24 }
0x1112   : > { %2006 = vst.msk [vmem:[%s496_s16] sm:$0xff] %vm507_vm0, %v2004_v2 }
0x1113   : > { %v1993_v27 = vsel %vm1992_vm5, %v2462_v47, %v1989_v26 }
0x1114   : > { %v1995_v28 = vmul.f32 %v1993_v27, %v1961_v63 }
0x1116   : > { %v2000_v30 = vmul.f32 %v2367_v19, %v1995_v28 }
0x1118   : > { %v2005_v31 = vadd.f32 %v2368_v0, %v2000_v30 }
0x111a   : > { %2007 = vst.msk [vmem:[%s496_s16 + $0x8] sm:$0xff] %vm507_vm0, %v2005_v31 }
0x111b PF: > { %s25_s18 = sadd.s32 1, %s2469_s18  }
0x111c   : > { %p22_p4 = scmp.ge.s32.totalorder %s25_s18, 4  }
0x111e   :  { %24 = sbr.rel (!%p22_p4) target bundleno = 1 (0x1), region = 122 }

</bundles_post_ra>
